<compile_context>
chip_gen: v7x
topology: tpu7x:2x2x1
jax: 0.10.0
libtpu: 0.0.40
codegen_flags: <defaults>
</compile_context>

<pallas_src>
import functools

import jax
import jax.numpy as jnp
import numpy as np
from jax.experimental import pallas as pl
from jax.experimental.pallas import tpu as pltpu


def _gru_attn_kernel(T, B, H, x_ref, wih_ref, bin_ref, whh_ref, bhn_ref, sel_ref,
                     w_omega_ref, u_omega_ref, w_out_ref, b_out_ref,
                     out_ref, gru_ref):
    H2, H3, H6 = 2 * H, 3 * H, 6 * H

    # ---- 1) Fused input projection for both directions: one MXU matmul. ----
    # Rows are time-major: row r = t*B + b.  Columns: [fwd r|z|n | bwd r|z|n].
    # The recurrent r/z biases are pre-folded into bin_ref.
    xp = (jnp.dot(x_ref[...], wih_ref[...], preferred_element_type=jnp.float32)
          + bin_ref[...])                                             # (T*B, 6H)

    # ---- 2) Fused bidirectional recurrence (fwd step t + bwd step T-1-t). ----
    whh = whh_ref[...]                                                # (2H, 6H), hoisted
    bhn = jnp.broadcast_to(bhn_ref[...], (B, H6))                     # hoisted broadcast
    h_f = jnp.zeros((B, H), jnp.float32)
    h_b = jnp.zeros((B, H), jnp.float32)

    for t in range(T):                     # static full unroll (T is a small constant)
        tb = T - 1 - t
        h_cat = jnp.concatenate([h_f, h_b], axis=1)                   # (B, 2H)
        gh = jnp.dot(h_cat, whh, preferred_element_type=jnp.float32) + bhn  # (B, 6H)
        xf = xp[t * B:(t + 1) * B, :]
        xb = xp[tb * B:(tb + 1) * B, :]

        # forward direction, time t
        r_f = jax.nn.sigmoid(xf[:, 0:H] + gh[:, 0:H])
        z_f = jax.nn.sigmoid(xf[:, H:H2] + gh[:, H:H2])
        n_f = jnp.tanh(xf[:, H2:H3] + r_f * gh[:, H2:H3])
        h_f = (1.0 - z_f) * n_f + z_f * h_f

        # backward direction, time T-1-t
        r_b = jax.nn.sigmoid(xb[:, H3:H3 + H] + gh[:, H3:H3 + H])
        z_b = jax.nn.sigmoid(xb[:, H3 + H:H3 + H2] + gh[:, H3 + H:H3 + H2])
        n_b = jnp.tanh(xb[:, H3 + H2:H6] + r_b * gh[:, H3 + H2:H6])
        h_b = (1.0 - z_b) * n_b + z_b * h_b

        # write both halves of the (T*B, 2H) output in place (no concat later)
        gru_ref[t * B:(t + 1) * B, 0:H] = h_f
        gru_ref[tb * B:(tb + 1) * B, H:H2] = h_b

    # NOTE: nn.Dropout(0.1) is identity in eval mode; no randomness applied here.
    gru_out = gru_ref[...]                                            # (T*B, 2H)

    # ---- 3) Attention pooling: softmax over time, per batch element. ----
    u = jnp.tanh(jnp.dot(gru_out, w_omega_ref[...],
                         preferred_element_type=jnp.float32))         # (T*B, 2H)
    att = jnp.sum(u * u_omega_ref[...], axis=-1, keepdims=True)       # (T*B, 1)
    # Subtracting the global max keeps each per-batch softmax mathematically exact
    # and avoids any (T*B,1) -> (T,B) relayout.
    e = jnp.exp(att - jnp.max(att, keepdims=True))                    # (T*B, 1)
    num = jnp.dot(sel_ref[...], gru_out * e,
                  preferred_element_type=jnp.float32)                 # (B, 2H)
    den = jnp.dot(sel_ref[...], e, preferred_element_type=jnp.float32)  # (B, 1)
    pooled = num * pl.reciprocal(den, approx=True)                    # (B, 2H)

    # ---- 4) Output linear layer. ----
    out_ref[...] = (jnp.dot(pooled, w_out_ref[...],
                            preferred_element_type=jnp.float32)
                    + b_out_ref[...]).astype(out_ref.dtype)


def classifier_forward(x, params):
    """x: (B, T, input_dim) float32  ->  (B, output_dim) float32 (eval-mode forward)."""
    B, T, D = x.shape
    H = params["whh_f"].shape[0]
    O = params["w_out"].shape[1]

    # Time-major flattened rows (row = t*B + b): the kernel never reshapes x.
    x2d = jnp.transpose(x, (1, 0, 2)).reshape(T * B, D)

    # Fused input-projection weight for both directions: (D, 6H).
    wih = jnp.concatenate([params["wih_f"], params["wih_b"]], axis=1)

    def fold_rz(bih, bhh):  # fold recurrent r/z biases into the time-invariant bias
        return jnp.concatenate([bih[:, :2 * H] + bhh[:, :2 * H], bih[:, 2 * H:]], axis=1)

    b_in = jnp.concatenate([fold_rz(params["bih_f"], params["bhh_f"]),
                            fold_rz(params["bih_b"], params["bhh_b"])], axis=1)  # (1, 6H)

    # Block-diagonal recurrent weight -> a single (B,2H)@(2H,6H) matmul per step.
    zero = jnp.zeros((H, 3 * H), jnp.float32)
    whh = jnp.concatenate([
        jnp.concatenate([params["whh_f"], zero], axis=1),
        jnp.concatenate([zero, params["whh_b"]], axis=1)], axis=0)               # (2H, 6H)

    # Recurrent n-gate bias (must remain inside r * (...)); zeros in the r/z slots.
    zrz = jnp.zeros((1, 2 * H), jnp.float32)
    b_hn = jnp.concatenate([zrz, params["bhh_f"][:, 2 * H:],
                            zrz, params["bhh_b"][:, 2 * H:]], axis=1)            # (1, 6H)

    # Constant batch-selection matrix: sel[b, t*B + b] = 1.
    sel = jnp.tile(jnp.eye(B, dtype=jnp.float32), (1, T))                        # (B, T*B)

    vmem = pl.BlockSpec(memory_space=pltpu.MemorySpace.VMEM)
    args = (x2d, wih, b_in, whh, b_hn, sel,
            params["w_omega"], params["u_omega_row"], params["w_out"], params["b_out"])

    # NOTE: for large batches, add a batch grid with
    # dimension_semantics=("parallel",) (shards across TensorCores on v7x) and an
    # explicit vmem_limit_bytes; at B=2 such a grid would be degenerate.
    return pl.pallas_call(
        functools.partial(_gru_attn_kernel, T, B, H),
        out_shape=jax.ShapeDtypeStruct((B, O), jnp.float32),
        in_specs=[vmem] * len(args),
        out_specs=vmem,
        scratch_shapes=[
            pltpu.VMEM((T * B, 2 * H), jnp.float32),   # bidirectional GRU outputs
        ],
    )(*args)


def init_params(key, input_dim, hidden_dim, output_dim):
    ks = jax.random.split(key, 12)
    s_gru = 1.0 / float(np.sqrt(hidden_dim))
    s_out = 1.0 / float(np.sqrt(2 * hidden_dim))

    def u(k, shape, lim):
        return jax.random.uniform(k, shape, jnp.float32, -lim, lim)

    return dict(
        wih_f=u(ks[0], (input_dim, 3 * hidden_dim), s_gru),
        whh_f=u(ks[1], (hidden_dim, 3 * hidden_dim), s_gru),
        bih_f=u(ks[2], (1, 3 * hidden_dim), s_gru),
        bhh_f=u(ks[3], (1, 3 * hidden_dim), s_gru),
        wih_b=u(ks[4], (input_dim, 3 * hidden_dim), s_gru),
        whh_b=u(ks[5], (hidden_dim, 3 * hidden_dim), s_gru),
        bih_b=u(ks[6], (1, 3 * hidden_dim), s_gru),
        bhh_b=u(ks[7], (1, 3 * hidden_dim), s_gru),
        w_omega=u(ks[8], (2 * hidden_dim, 2 * hidden_dim), 0.1),
        u_omega_row=u(ks[9], (1, 2 * hidden_dim), 0.1),   # torch (2H,1) stored as row
        w_out=u(ks[10], (2 * hidden_dim, output_dim), s_out),
        b_out=u(ks[11], (1, output_dim), s_out),
    )


def reference_forward(x, p):
    """Pure-JAX reference mirroring the PyTorch forward (eval mode)."""
    B, T, D = x.shape
    H = p["whh_f"].shape[0]

    def cell(h, x_t, wih, whh, bih, bhh):
        gi = x_t @ wih + bih[0]
        gh = h @ whh + bhh[0]
        r = jax.nn.sigmoid(gi[:, :H] + gh[:, :H])
        z = jax.nn.sigmoid(gi[:, H:2 * H] + gh[:, H:2 * H])
        n = jnp.tanh(gi[:, 2 * H:] + r * gh[:, 2 * H:])
        return (1.0 - z) * n + z * h

    h = jnp.zeros((B, H), jnp.float32)
    outs_f = []
    for t in range(T):
        h = cell(h, x[:, t], p["wih_f"], p["whh_f"], p["bih_f"], p["bhh_f"])
        outs_f.append(h)
    h = jnp.zeros((B, H), jnp.float32)
    outs_b = [None] * T
    for t in range(T - 1, -1, -1):
        h = cell(h, x[:, t], p["wih_b"], p["whh_b"], p["bih_b"], p["bhh_b"])
        outs_b[t] = h
    out = jnp.concatenate([jnp.stack(outs_f, 1), jnp.stack(outs_b, 1)], -1)  # (B,T,2H)
    u = jnp.tanh(out @ p["w_omega"])
    att = u @ p["u_omega_row"].T                  # (B, T, 1)
    att_score = jax.nn.softmax(att, axis=1)
    pooled = jnp.sum(out * att_score, axis=1)     # (B, 2H)
    return pooled @ p["w_out"] + p["b_out"][0]


if __name__ == "__main__":
    B, T, D, H, O = 2, 8, 16, 32, 4   # batch, seq, input_dim, hidden_dim, output_dim
    key = jax.random.PRNGKey(0)
    kx, kp = jax.random.split(key)
    x = jax.random.normal(kx, (B, T, D), jnp.float32)
    params = init_params(kp, D, H, O)

    out = jax.block_until_ready(classifier_forward(x, params))
    ref = jax.block_until_ready(reference_forward(x, params))

    assert out.shape == (B, O)
    np.testing.assert_allclose(np.asarray(out), np.asarray(ref), rtol=2e-2, atol=2e-2)
    print("KERNEL_OK")
</pallas_src>

<mosaic_0001>
module attributes {stable_mosaic.version = 11 : i64} {
  func.func @_gru_attn_kernel(%arg0: memref<16x16xf32, #tpu.memory_space<vmem>>, %arg1: memref<16x192xf32, #tpu.memory_space<vmem>>, %arg2: memref<1x192xf32, #tpu.memory_space<vmem>>, %arg3: memref<64x192xf32, #tpu.memory_space<vmem>>, %arg4: memref<1x192xf32, #tpu.memory_space<vmem>>, %arg5: memref<2x16xf32, #tpu.memory_space<vmem>>, %arg6: memref<64x64xf32, #tpu.memory_space<vmem>>, %arg7: memref<1x64xf32, #tpu.memory_space<vmem>>, %arg8: memref<64x4xf32, #tpu.memory_space<vmem>>, %arg9: memref<1x4xf32, #tpu.memory_space<vmem>>, %arg10: memref<2x4xf32, #tpu.memory_space<vmem>>, %arg11: memref<16x64xf32, #tpu.memory_space<vmem>>) attributes {dimension_semantics = [], scalar_prefetch = 0 : i64, scratch_operands = 1 : i64, tpu.core_type = #tpu.core_type<tc>} {
    %c0 = arith.constant 0 : index
    %c0_0 = arith.constant 0 : index
    %0 = vector.load %arg0[%c0, %c0_0] : memref<16x16xf32, #tpu.memory_space<vmem>>, vector<16x16xf32>
    %c0_1 = arith.constant 0 : index
    %c0_2 = arith.constant 0 : index
    %1 = vector.load %arg1[%c0_1, %c0_2] : memref<16x192xf32, #tpu.memory_space<vmem>>, vector<16x192xf32>
    %cst = arith.constant dense<0.000000e+00> : vector<16x192xf32>
    %2 = tpu.matmul %0, %1, %cst {dimension_numbers = #tpu.dot_dimension_numbers<[1], [0], [0], [1], [0, 0, 1, 1], [], []>} : vector<16x16xf32>, vector<16x192xf32>, vector<16x192xf32> -> vector<16x192xf32>
    %c0_3 = arith.constant 0 : index
    %c0_4 = arith.constant 0 : index
    %3 = vector.load %arg2[%c0_3, %c0_4] : memref<1x192xf32, #tpu.memory_space<vmem>>, vector<1x192xf32>
    %4 = vector.broadcast %3 : vector<1x192xf32> to vector<16x192xf32>
    %5 = arith.addf %2, %4 : vector<16x192xf32>
    %c0_5 = arith.constant 0 : index
    %c0_6 = arith.constant 0 : index
    %6 = vector.load %arg3[%c0_5, %c0_6] : memref<64x192xf32, #tpu.memory_space<vmem>>, vector<64x192xf32>
    %c0_7 = arith.constant 0 : index
    %c0_8 = arith.constant 0 : index
    %7 = vector.load %arg4[%c0_7, %c0_8] : memref<1x192xf32, #tpu.memory_space<vmem>>, vector<1x192xf32>
    %8 = vector.shape_cast %7 : vector<1x192xf32> to vector<1x192xf32>
    %9 = vector.broadcast %8 : vector<1x192xf32> to vector<2x192xf32>
    %cst_9 = arith.constant 0.000000e+00 : f32
    %10 = vector.broadcast %cst_9 : f32 to vector<2x32xf32>
    %cst_10 = arith.constant 0.000000e+00 : f32
    %11 = vector.broadcast %cst_10 : f32 to vector<2x32xf32>
    %12 = tpu.concatenate %10, %11 in 1 : vector<2x32xf32>, vector<2x32xf32> -> vector<2x64xf32>
    %cst_11 = arith.constant dense<0.000000e+00> : vector<2x192xf32>
    %13 = tpu.matmul %12, %6, %cst_11 {dimension_numbers = #tpu.dot_dimension_numbers<[1], [0], [0], [1], [0, 0, 1, 1], [], []>} : vector<2x64xf32>, vector<64x192xf32>, vector<2x192xf32> -> vector<2x192xf32>
    %14 = arith.addf %13, %9 : vector<2x192xf32>
    %15 = vector.extract_strided_slice %5 {offsets = [0, 0], sizes = [2, 192], strides = [1, 1]} : vector<16x192xf32> to vector<2x192xf32>
    %16 = vector.extract_strided_slice %5 {offsets = [14, 0], sizes = [2, 192], strides = [1, 1]} : vector<16x192xf32> to vector<2x192xf32>
    %17 = vector.extract_strided_slice %15 {offsets = [0, 0], sizes = [2, 32], strides = [1, 1]} : vector<2x192xf32> to vector<2x32xf32>
    %18 = vector.extract_strided_slice %14 {offsets = [0, 0], sizes = [2, 32], strides = [1, 1]} : vector<2x192xf32> to vector<2x32xf32>
    %19 = arith.addf %17, %18 : vector<2x32xf32>
    %20 = arith.negf %19 : vector<2x32xf32>
    %21 = math.exp %20 : vector<2x32xf32>
    %cst_12 = arith.constant 1.000000e+00 : f32
    %22 = vector.broadcast %cst_12 : f32 to vector<2x32xf32>
    %23 = arith.addf %22, %21 : vector<2x32xf32>
    %24 = arith.divf %22, %23 : vector<2x32xf32>
    %25 = vector.extract_strided_slice %15 {offsets = [0, 32], sizes = [2, 32], strides = [1, 1]} : vector<2x192xf32> to vector<2x32xf32>
    %26 = vector.extract_strided_slice %14 {offsets = [0, 32], sizes = [2, 32], strides = [1, 1]} : vector<2x192xf32> to vector<2x32xf32>
    %27 = arith.addf %25, %26 : vector<2x32xf32>
    %28 = arith.negf %27 : vector<2x32xf32>
    %29 = math.exp %28 : vector<2x32xf32>
    %cst_13 = arith.constant 1.000000e+00 : f32
    %30 = vector.broadcast %cst_13 : f32 to vector<2x32xf32>
    %31 = arith.addf %30, %29 : vector<2x32xf32>
    %32 = arith.divf %30, %31 : vector<2x32xf32>
    %33 = vector.extract_strided_slice %15 {offsets = [0, 64], sizes = [2, 32], strides = [1, 1]} : vector<2x192xf32> to vector<2x32xf32>
    %34 = vector.extract_strided_slice %14 {offsets = [0, 64], sizes = [2, 32], strides = [1, 1]} : vector<2x192xf32> to vector<2x32xf32>
    %35 = arith.mulf %24, %34 : vector<2x32xf32>
    %36 = arith.addf %33, %35 : vector<2x32xf32>
    %37 = math.tanh %36 : vector<2x32xf32>
    %cst_14 = arith.constant 1.000000e+00 : f32
    %38 = vector.broadcast %cst_14 : f32 to vector<2x32xf32>
    %39 = arith.subf %38, %32 : vector<2x32xf32>
    %40 = arith.mulf %39, %37 : vector<2x32xf32>
    %41 = arith.mulf %32, %10 : vector<2x32xf32>
    %42 = arith.addf %40, %41 : vector<2x32xf32>
    %43 = vector.extract_strided_slice %16 {offsets = [0, 96], sizes = [2, 32], strides = [1, 1]} : vector<2x192xf32> to vector<2x32xf32>
    %44 = vector.extract_strided_slice %14 {offsets = [0, 96], sizes = [2, 32], strides = [1, 1]} : vector<2x192xf32> to vector<2x32xf32>
    %45 = arith.addf %43, %44 : vector<2x32xf32>
    %46 = arith.negf %45 : vector<2x32xf32>
    %47 = math.exp %46 : vector<2x32xf32>
    %cst_15 = arith.constant 1.000000e+00 : f32
    %48 = vector.broadcast %cst_15 : f32 to vector<2x32xf32>
    %49 = arith.addf %48, %47 : vector<2x32xf32>
    %50 = arith.divf %48, %49 : vector<2x32xf32>
    %51 = vector.extract_strided_slice %16 {offsets = [0, 128], sizes = [2, 32], strides = [1, 1]} : vector<2x192xf32> to vector<2x32xf32>
    %52 = vector.extract_strided_slice %14 {offsets = [0, 128], sizes = [2, 32], strides = [1, 1]} : vector<2x192xf32> to vector<2x32xf32>
    %53 = arith.addf %51, %52 : vector<2x32xf32>
    %54 = arith.negf %53 : vector<2x32xf32>
    %55 = math.exp %54 : vector<2x32xf32>
    %cst_16 = arith.constant 1.000000e+00 : f32
    %56 = vector.broadcast %cst_16 : f32 to vector<2x32xf32>
    %57 = arith.addf %56, %55 : vector<2x32xf32>
    %58 = arith.divf %56, %57 : vector<2x32xf32>
    %59 = vector.extract_strided_slice %16 {offsets = [0, 160], sizes = [2, 32], strides = [1, 1]} : vector<2x192xf32> to vector<2x32xf32>
    %60 = vector.extract_strided_slice %14 {offsets = [0, 160], sizes = [2, 32], strides = [1, 1]} : vector<2x192xf32> to vector<2x32xf32>
    %61 = arith.mulf %50, %60 : vector<2x32xf32>
    %62 = arith.addf %59, %61 : vector<2x32xf32>
    %63 = math.tanh %62 : vector<2x32xf32>
    %cst_17 = arith.constant 1.000000e+00 : f32
    %64 = vector.broadcast %cst_17 : f32 to vector<2x32xf32>
    %65 = arith.subf %64, %58 : vector<2x32xf32>
    %66 = arith.mulf %65, %63 : vector<2x32xf32>
    %67 = arith.mulf %58, %11 : vector<2x32xf32>
    %68 = arith.addf %66, %67 : vector<2x32xf32>
    %c0_18 = arith.constant 0 : index
    %c0_19 = arith.constant 0 : index
    %69 = vector.load %arg11[%c0_18, %c0_19] : memref<16x64xf32, #tpu.memory_space<vmem>>, vector<2x32xf32>
    tpu.vector_store %arg11[%c0_18, %c0_19], %42 {strides = array<i32>} : memref<16x64xf32, #tpu.memory_space<vmem>>, vector<2x32xf32>,
    %c14 = arith.constant 14 : index
    %c32 = arith.constant 32 : index
    %70 = vector.load %arg11[%c14, %c32] : memref<16x64xf32, #tpu.memory_space<vmem>>, vector<2x32xf32>
    tpu.vector_store %arg11[%c14, %c32], %68 {strides = array<i32>} : memref<16x64xf32, #tpu.memory_space<vmem>>, vector<2x32xf32>,
    %71 = tpu.concatenate %42, %68 in 1 : vector<2x32xf32>, vector<2x32xf32> -> vector<2x64xf32>
    %cst_20 = arith.constant dense<0.000000e+00> : vector<2x192xf32>
    %72 = tpu.matmul %71, %6, %cst_20 {dimension_numbers = #tpu.dot_dimension_numbers<[1], [0], [0], [1], [0, 0, 1, 1], [], []>} : vector<2x64xf32>, vector<64x192xf32>, vector<2x192xf32> -> vector<2x192xf32>
    %73 = arith.addf %72, %9 : vector<2x192xf32>
    %74 = vector.extract_strided_slice %5 {offsets = [2, 0], sizes = [2, 192], strides = [1, 1]} : vector<16x192xf32> to vector<2x192xf32>
    %75 = vector.extract_strided_slice %5 {offsets = [12, 0], sizes = [2, 192], strides = [1, 1]} : vector<16x192xf32> to vector<2x192xf32>
    %76 = vector.extract_strided_slice %74 {offsets = [0, 0], sizes = [2, 32], strides = [1, 1]} : vector<2x192xf32> to vector<2x32xf32>
    %77 = vector.extract_strided_slice %73 {offsets = [0, 0], sizes = [2, 32], strides = [1, 1]} : vector<2x192xf32> to vector<2x32xf32>
    %78 = arith.addf %76, %77 : vector<2x32xf32>
    %79 = arith.negf %78 : vector<2x32xf32>
    %80 = math.exp %79 : vector<2x32xf32>
    %cst_21 = arith.constant 1.000000e+00 : f32
    %81 = vector.broadcast %cst_21 : f32 to vector<2x32xf32>
    %82 = arith.addf %81, %80 : vector<2x32xf32>
    %83 = arith.divf %81, %82 : vector<2x32xf32>
    %84 = vector.extract_strided_slice %74 {offsets = [0, 32], sizes = [2, 32], strides = [1, 1]} : vector<2x192xf32> to vector<2x32xf32>
    %85 = vector.extract_strided_slice %73 {offsets = [0, 32], sizes = [2, 32], strides = [1, 1]} : vector<2x192xf32> to vector<2x32xf32>
    %86 = arith.addf %84, %85 : vector<2x32xf32>
    %87 = arith.negf %86 : vector<2x32xf32>
    %88 = math.exp %87 : vector<2x32xf32>
    %cst_22 = arith.constant 1.000000e+00 : f32
    %89 = vector.broadcast %cst_22 : f32 to vector<2x32xf32>
    %90 = arith.addf %89, %88 : vector<2x32xf32>
    %91 = arith.divf %89, %90 : vector<2x32xf32>
    %92 = vector.extract_strided_slice %74 {offsets = [0, 64], sizes = [2, 32], strides = [1, 1]} : vector<2x192xf32> to vector<2x32xf32>
    %93 = vector.extract_strided_slice %73 {offsets = [0, 64], sizes = [2, 32], strides = [1, 1]} : vector<2x192xf32> to vector<2x32xf32>
    %94 = arith.mulf %83, %93 : vector<2x32xf32>
    %95 = arith.addf %92, %94 : vector<2x32xf32>
    %96 = math.tanh %95 : vector<2x32xf32>
    %cst_23 = arith.constant 1.000000e+00 : f32
    %97 = vector.broadcast %cst_23 : f32 to vector<2x32xf32>
    %98 = arith.subf %97, %91 : vector<2x32xf32>
    %99 = arith.mulf %98, %96 : vector<2x32xf32>
    %100 = arith.mulf %91, %42 : vector<2x32xf32>
    %101 = arith.addf %99, %100 : vector<2x32xf32>
    %102 = vector.extract_strided_slice %75 {offsets = [0, 96], sizes = [2, 32], strides = [1, 1]} : vector<2x192xf32> to vector<2x32xf32>
    %103 = vector.extract_strided_slice %73 {offsets = [0, 96], sizes = [2, 32], strides = [1, 1]} : vector<2x192xf32> to vector<2x32xf32>
    %104 = arith.addf %102, %103 : vector<2x32xf32>
    %105 = arith.negf %104 : vector<2x32xf32>
    %106 = math.exp %105 : vector<2x32xf32>
    %cst_24 = arith.constant 1.000000e+00 : f32
    %107 = vector.broadcast %cst_24 : f32 to vector<2x32xf32>
    %108 = arith.addf %107, %106 : vector<2x32xf32>
    %109 = arith.divf %107, %108 : vector<2x32xf32>
    %110 = vector.extract_strided_slice %75 {offsets = [0, 128], sizes = [2, 32], strides = [1, 1]} : vector<2x192xf32> to vector<2x32xf32>
    %111 = vector.extract_strided_slice %73 {offsets = [0, 128], sizes = [2, 32], strides = [1, 1]} : vector<2x192xf32> to vector<2x32xf32>
    %112 = arith.addf %110, %111 : vector<2x32xf32>
    %113 = arith.negf %112 : vector<2x32xf32>
    %114 = math.exp %113 : vector<2x32xf32>
    %cst_25 = arith.constant 1.000000e+00 : f32
    %115 = vector.broadcast %cst_25 : f32 to vector<2x32xf32>
    %116 = arith.addf %115, %114 : vector<2x32xf32>
    %117 = arith.divf %115, %116 : vector<2x32xf32>
    %118 = vector.extract_strided_slice %75 {offsets = [0, 160], sizes = [2, 32], strides = [1, 1]} : vector<2x192xf32> to vector<2x32xf32>
    %119 = vector.extract_strided_slice %73 {offsets = [0, 160], sizes = [2, 32], strides = [1, 1]} : vector<2x192xf32> to vector<2x32xf32>
    %120 = arith.mulf %109, %119 : vector<2x32xf32>
    %121 = arith.addf %118, %120 : vector<2x32xf32>
    %122 = math.tanh %121 : vector<2x32xf32>
    %cst_26 = arith.constant 1.000000e+00 : f32
    %123 = vector.broadcast %cst_26 : f32 to vector<2x32xf32>
    %124 = arith.subf %123, %117 : vector<2x32xf32>
    %125 = arith.mulf %124, %122 : vector<2x32xf32>
    %126 = arith.mulf %117, %68 : vector<2x32xf32>
    %127 = arith.addf %125, %126 : vector<2x32xf32>
    %c2 = arith.constant 2 : index
    %c0_27 = arith.constant 0 : index
    %128 = vector.load %arg11[%c2, %c0_27] : memref<16x64xf32, #tpu.memory_space<vmem>>, vector<2x32xf32>
    tpu.vector_store %arg11[%c2, %c0_27], %101 {strides = array<i32>} : memref<16x64xf32, #tpu.memory_space<vmem>>, vector<2x32xf32>,
    %c12 = arith.constant 12 : index
    %c32_28 = arith.constant 32 : index
    %129 = vector.load %arg11[%c12, %c32_28] : memref<16x64xf32, #tpu.memory_space<vmem>>, vector<2x32xf32>
    tpu.vector_store %arg11[%c12, %c32_28], %127 {strides = array<i32>} : memref<16x64xf32, #tpu.memory_space<vmem>>, vector<2x32xf32>,
    %130 = tpu.concatenate %101, %127 in 1 : vector<2x32xf32>, vector<2x32xf32> -> vector<2x64xf32>
    %cst_29 = arith.constant dense<0.000000e+00> : vector<2x192xf32>
    %131 = tpu.matmul %130, %6, %cst_29 {dimension_numbers = #tpu.dot_dimension_numbers<[1], [0], [0], [1], [0, 0, 1, 1], [], []>} : vector<2x64xf32>, vector<64x192xf32>, vector<2x192xf32> -> vector<2x192xf32>
    %132 = arith.addf %131, %9 : vector<2x192xf32>
    %133 = vector.extract_strided_slice %5 {offsets = [4, 0], sizes = [2, 192], strides = [1, 1]} : vector<16x192xf32> to vector<2x192xf32>
    %134 = vector.extract_strided_slice %5 {offsets = [10, 0], sizes = [2, 192], strides = [1, 1]} : vector<16x192xf32> to vector<2x192xf32>
    %135 = vector.extract_strided_slice %133 {offsets = [0, 0], sizes = [2, 32], strides = [1, 1]} : vector<2x192xf32> to vector<2x32xf32>
    %136 = vector.extract_strided_slice %132 {offsets = [0, 0], sizes = [2, 32], strides = [1, 1]} : vector<2x192xf32> to vector<2x32xf32>
    %137 = arith.addf %135, %136 : vector<2x32xf32>
    %138 = arith.negf %137 : vector<2x32xf32>
    %139 = math.exp %138 : vector<2x32xf32>
    %cst_30 = arith.constant 1.000000e+00 : f32
    %140 = vector.broadcast %cst_30 : f32 to vector<2x32xf32>
    %141 = arith.addf %140, %139 : vector<2x32xf32>
    %142 = arith.divf %140, %141 : vector<2x32xf32>
    %143 = vector.extract_strided_slice %133 {offsets = [0, 32], sizes = [2, 32], strides = [1, 1]} : vector<2x192xf32> to vector<2x32xf32>
    %144 = vector.extract_strided_slice %132 {offsets = [0, 32], sizes = [2, 32], strides = [1, 1]} : vector<2x192xf32> to vector<2x32xf32>
    %145 = arith.addf %143, %144 : vector<2x32xf32>
    %146 = arith.negf %145 : vector<2x32xf32>
    %147 = math.exp %146 : vector<2x32xf32>
    %cst_31 = arith.constant 1.000000e+00 : f32
    %148 = vector.broadcast %cst_31 : f32 to vector<2x32xf32>
    %149 = arith.addf %148, %147 : vector<2x32xf32>
    %150 = arith.divf %148, %149 : vector<2x32xf32>
    %151 = vector.extract_strided_slice %133 {offsets = [0, 64], sizes = [2, 32], strides = [1, 1]} : vector<2x192xf32> to vector<2x32xf32>
    %152 = vector.extract_strided_slice %132 {offsets = [0, 64], sizes = [2, 32], strides = [1, 1]} : vector<2x192xf32> to vector<2x32xf32>
    %153 = arith.mulf %142, %152 : vector<2x32xf32>
    %154 = arith.addf %151, %153 : vector<2x32xf32>
    %155 = math.tanh %154 : vector<2x32xf32>
    %cst_32 = arith.constant 1.000000e+00 : f32
    %156 = vector.broadcast %cst_32 : f32 to vector<2x32xf32>
    %157 = arith.subf %156, %150 : vector<2x32xf32>
    %158 = arith.mulf %157, %155 : vector<2x32xf32>
    %159 = arith.mulf %150, %101 : vector<2x32xf32>
    %160 = arith.addf %158, %159 : vector<2x32xf32>
    %161 = vector.extract_strided_slice %134 {offsets = [0, 96], sizes = [2, 32], strides = [1, 1]} : vector<2x192xf32> to vector<2x32xf32>
    %162 = vector.extract_strided_slice %132 {offsets = [0, 96], sizes = [2, 32], strides = [1, 1]} : vector<2x192xf32> to vector<2x32xf32>
    %163 = arith.addf %161, %162 : vector<2x32xf32>
    %164 = arith.negf %163 : vector<2x32xf32>
    %165 = math.exp %164 : vector<2x32xf32>
    %cst_33 = arith.constant 1.000000e+00 : f32
    %166 = vector.broadcast %cst_33 : f32 to vector<2x32xf32>
    %167 = arith.addf %166, %165 : vector<2x32xf32>
    %168 = arith.divf %166, %167 : vector<2x32xf32>
    %169 = vector.extract_strided_slice %134 {offsets = [0, 128], sizes = [2, 32], strides = [1, 1]} : vector<2x192xf32> to vector<2x32xf32>
    %170 = vector.extract_strided_slice %132 {offsets = [0, 128], sizes = [2, 32], strides = [1, 1]} : vector<2x192xf32> to vector<2x32xf32>
    %171 = arith.addf %169, %170 : vector<2x32xf32>
    %172 = arith.negf %171 : vector<2x32xf32>
    %173 = math.exp %172 : vector<2x32xf32>
    %cst_34 = arith.constant 1.000000e+00 : f32
    %174 = vector.broadcast %cst_34 : f32 to vector<2x32xf32>
    %175 = arith.addf %174, %173 : vector<2x32xf32>
    %176 = arith.divf %174, %175 : vector<2x32xf32>
    %177 = vector.extract_strided_slice %134 {offsets = [0, 160], sizes = [2, 32], strides = [1, 1]} : vector<2x192xf32> to vector<2x32xf32>
    %178 = vector.extract_strided_slice %132 {offsets = [0, 160], sizes = [2, 32], strides = [1, 1]} : vector<2x192xf32> to vector<2x32xf32>
    %179 = arith.mulf %168, %178 : vector<2x32xf32>
    %180 = arith.addf %177, %179 : vector<2x32xf32>
    %181 = math.tanh %180 : vector<2x32xf32>
    %cst_35 = arith.constant 1.000000e+00 : f32
    %182 = vector.broadcast %cst_35 : f32 to vector<2x32xf32>
    %183 = arith.subf %182, %176 : vector<2x32xf32>
    %184 = arith.mulf %183, %181 : vector<2x32xf32>
    %185 = arith.mulf %176, %127 : vector<2x32xf32>
    %186 = arith.addf %184, %185 : vector<2x32xf32>
    %c4 = arith.constant 4 : index
    %c0_36 = arith.constant 0 : index
    %187 = vector.load %arg11[%c4, %c0_36] : memref<16x64xf32, #tpu.memory_space<vmem>>, vector<2x32xf32>
    tpu.vector_store %arg11[%c4, %c0_36], %160 {strides = array<i32>} : memref<16x64xf32, #tpu.memory_space<vmem>>, vector<2x32xf32>,
    %c10 = arith.constant 10 : index
    %c32_37 = arith.constant 32 : index
    %188 = vector.load %arg11[%c10, %c32_37] : memref<16x64xf32, #tpu.memory_space<vmem>>, vector<2x32xf32>
    tpu.vector_store %arg11[%c10, %c32_37], %186 {strides = array<i32>} : memref<16x64xf32, #tpu.memory_space<vmem>>, vector<2x32xf32>,
    %189 = tpu.concatenate %160, %186 in 1 : vector<2x32xf32>, vector<2x32xf32> -> vector<2x64xf32>
    %cst_38 = arith.constant dense<0.000000e+00> : vector<2x192xf32>
    %190 = tpu.matmul %189, %6, %cst_38 {dimension_numbers = #tpu.dot_dimension_numbers<[1], [0], [0], [1], [0, 0, 1, 1], [], []>} : vector<2x64xf32>, vector<64x192xf32>, vector<2x192xf32> -> vector<2x192xf32>
    %191 = arith.addf %190, %9 : vector<2x192xf32>
    %192 = vector.extract_strided_slice %5 {offsets = [6, 0], sizes = [2, 192], strides = [1, 1]} : vector<16x192xf32> to vector<2x192xf32>
    %193 = vector.extract_strided_slice %5 {offsets = [8, 0], sizes = [2, 192], strides = [1, 1]} : vector<16x192xf32> to vector<2x192xf32>
    %194 = vector.extract_strided_slice %192 {offsets = [0, 0], sizes = [2, 32], strides = [1, 1]} : vector<2x192xf32> to vector<2x32xf32>
    %195 = vector.extract_strided_slice %191 {offsets = [0, 0], sizes = [2, 32], strides = [1, 1]} : vector<2x192xf32> to vector<2x32xf32>
    %196 = arith.addf %194, %195 : vector<2x32xf32>
    %197 = arith.negf %196 : vector<2x32xf32>
    %198 = math.exp %197 : vector<2x32xf32>
    %cst_39 = arith.constant 1.000000e+00 : f32
    %199 = vector.broadcast %cst_39 : f32 to vector<2x32xf32>
    %200 = arith.addf %199, %198 : vector<2x32xf32>
    %201 = arith.divf %199, %200 : vector<2x32xf32>
    %202 = vector.extract_strided_slice %192 {offsets = [0, 32], sizes = [2, 32], strides = [1, 1]} : vector<2x192xf32> to vector<2x32xf32>
    %203 = vector.extract_strided_slice %191 {offsets = [0, 32], sizes = [2, 32], strides = [1, 1]} : vector<2x192xf32> to vector<2x32xf32>
    %204 = arith.addf %202, %203 : vector<2x32xf32>
    %205 = arith.negf %204 : vector<2x32xf32>
    %206 = math.exp %205 : vector<2x32xf32>
    %cst_40 = arith.constant 1.000000e+00 : f32
    %207 = vector.broadcast %cst_40 : f32 to vector<2x32xf32>
    %208 = arith.addf %207, %206 : vector<2x32xf32>
    %209 = arith.divf %207, %208 : vector<2x32xf32>
    %210 = vector.extract_strided_slice %192 {offsets = [0, 64], sizes = [2, 32], strides = [1, 1]} : vector<2x192xf32> to vector<2x32xf32>
    %211 = vector.extract_strided_slice %191 {offsets = [0, 64], sizes = [2, 32], strides = [1, 1]} : vector<2x192xf32> to vector<2x32xf32>
    %212 = arith.mulf %201, %211 : vector<2x32xf32>
    %213 = arith.addf %210, %212 : vector<2x32xf32>
    %214 = math.tanh %213 : vector<2x32xf32>
    %cst_41 = arith.constant 1.000000e+00 : f32
    %215 = vector.broadcast %cst_41 : f32 to vector<2x32xf32>
    %216 = arith.subf %215, %209 : vector<2x32xf32>
    %217 = arith.mulf %216, %214 : vector<2x32xf32>
    %218 = arith.mulf %209, %160 : vector<2x32xf32>
    %219 = arith.addf %217, %218 : vector<2x32xf32>
    %220 = vector.extract_strided_slice %193 {offsets = [0, 96], sizes = [2, 32], strides = [1, 1]} : vector<2x192xf32> to vector<2x32xf32>
    %221 = vector.extract_strided_slice %191 {offsets = [0, 96], sizes = [2, 32], strides = [1, 1]} : vector<2x192xf32> to vector<2x32xf32>
    %222 = arith.addf %220, %221 : vector<2x32xf32>
    %223 = arith.negf %222 : vector<2x32xf32>
    %224 = math.exp %223 : vector<2x32xf32>
    %cst_42 = arith.constant 1.000000e+00 : f32
    %225 = vector.broadcast %cst_42 : f32 to vector<2x32xf32>
    %226 = arith.addf %225, %224 : vector<2x32xf32>
    %227 = arith.divf %225, %226 : vector<2x32xf32>
    %228 = vector.extract_strided_slice %193 {offsets = [0, 128], sizes = [2, 32], strides = [1, 1]} : vector<2x192xf32> to vector<2x32xf32>
    %229 = vector.extract_strided_slice %191 {offsets = [0, 128], sizes = [2, 32], strides = [1, 1]} : vector<2x192xf32> to vector<2x32xf32>
    %230 = arith.addf %228, %229 : vector<2x32xf32>
    %231 = arith.negf %230 : vector<2x32xf32>
    %232 = math.exp %231 : vector<2x32xf32>
    %cst_43 = arith.constant 1.000000e+00 : f32
    %233 = vector.broadcast %cst_43 : f32 to vector<2x32xf32>
    %234 = arith.addf %233, %232 : vector<2x32xf32>
    %235 = arith.divf %233, %234 : vector<2x32xf32>
    %236 = vector.extract_strided_slice %193 {offsets = [0, 160], sizes = [2, 32], strides = [1, 1]} : vector<2x192xf32> to vector<2x32xf32>
    %237 = vector.extract_strided_slice %191 {offsets = [0, 160], sizes = [2, 32], strides = [1, 1]} : vector<2x192xf32> to vector<2x32xf32>
    %238 = arith.mulf %227, %237 : vector<2x32xf32>
    %239 = arith.addf %236, %238 : vector<2x32xf32>
    %240 = math.tanh %239 : vector<2x32xf32>
    %cst_44 = arith.constant 1.000000e+00 : f32
    %241 = vector.broadcast %cst_44 : f32 to vector<2x32xf32>
    %242 = arith.subf %241, %235 : vector<2x32xf32>
    %243 = arith.mulf %242, %240 : vector<2x32xf32>
    %244 = arith.mulf %235, %186 : vector<2x32xf32>
    %245 = arith.addf %243, %244 : vector<2x32xf32>
    %c6 = arith.constant 6 : index
    %c0_45 = arith.constant 0 : index
    %246 = vector.load %arg11[%c6, %c0_45] : memref<16x64xf32, #tpu.memory_space<vmem>>, vector<2x32xf32>
    tpu.vector_store %arg11[%c6, %c0_45], %219 {strides = array<i32>} : memref<16x64xf32, #tpu.memory_space<vmem>>, vector<2x32xf32>,
    %c8 = arith.constant 8 : index
    %c32_46 = arith.constant 32 : index
    %247 = vector.load %arg11[%c8, %c32_46] : memref<16x64xf32, #tpu.memory_space<vmem>>, vector<2x32xf32>
    tpu.vector_store %arg11[%c8, %c32_46], %245 {strides = array<i32>} : memref<16x64xf32, #tpu.memory_space<vmem>>, vector<2x32xf32>,
    %248 = tpu.concatenate %219, %245 in 1 : vector<2x32xf32>, vector<2x32xf32> -> vector<2x64xf32>
    %cst_47 = arith.constant dense<0.000000e+00> : vector<2x192xf32>
    %249 = tpu.matmul %248, %6, %cst_47 {dimension_numbers = #tpu.dot_dimension_numbers<[1], [0], [0], [1], [0, 0, 1, 1], [], []>} : vector<2x64xf32>, vector<64x192xf32>, vector<2x192xf32> -> vector<2x192xf32>
    %250 = arith.addf %249, %9 : vector<2x192xf32>
    %251 = vector.extract_strided_slice %5 {offsets = [8, 0], sizes = [2, 192], strides = [1, 1]} : vector<16x192xf32> to vector<2x192xf32>
    %252 = vector.extract_strided_slice %5 {offsets = [6, 0], sizes = [2, 192], strides = [1, 1]} : vector<16x192xf32> to vector<2x192xf32>
    %253 = vector.extract_strided_slice %251 {offsets = [0, 0], sizes = [2, 32], strides = [1, 1]} : vector<2x192xf32> to vector<2x32xf32>
    %254 = vector.extract_strided_slice %250 {offsets = [0, 0], sizes = [2, 32], strides = [1, 1]} : vector<2x192xf32> to vector<2x32xf32>
    %255 = arith.addf %253, %254 : vector<2x32xf32>
    %256 = arith.negf %255 : vector<2x32xf32>
    %257 = math.exp %256 : vector<2x32xf32>
    %cst_48 = arith.constant 1.000000e+00 : f32
    %258 = vector.broadcast %cst_48 : f32 to vector<2x32xf32>
    %259 = arith.addf %258, %257 : vector<2x32xf32>
    %260 = arith.divf %258, %259 : vector<2x32xf32>
    %261 = vector.extract_strided_slice %251 {offsets = [0, 32], sizes = [2, 32], strides = [1, 1]} : vector<2x192xf32> to vector<2x32xf32>
    %262 = vector.extract_strided_slice %250 {offsets = [0, 32], sizes = [2, 32], strides = [1, 1]} : vector<2x192xf32> to vector<2x32xf32>
    %263 = arith.addf %261, %262 : vector<2x32xf32>
    %264 = arith.negf %263 : vector<2x32xf32>
    %265 = math.exp %264 : vector<2x32xf32>
    %cst_49 = arith.constant 1.000000e+00 : f32
    %266 = vector.broadcast %cst_49 : f32 to vector<2x32xf32>
    %267 = arith.addf %266, %265 : vector<2x32xf32>
    %268 = arith.divf %266, %267 : vector<2x32xf32>
    %269 = vector.extract_strided_slice %251 {offsets = [0, 64], sizes = [2, 32], strides = [1, 1]} : vector<2x192xf32> to vector<2x32xf32>
    %270 = vector.extract_strided_slice %250 {offsets = [0, 64], sizes = [2, 32], strides = [1, 1]} : vector<2x192xf32> to vector<2x32xf32>
    %271 = arith.mulf %260, %270 : vector<2x32xf32>
    %272 = arith.addf %269, %271 : vector<2x32xf32>
    %273 = math.tanh %272 : vector<2x32xf32>
    %cst_50 = arith.constant 1.000000e+00 : f32
    %274 = vector.broadcast %cst_50 : f32 to vector<2x32xf32>
    %275 = arith.subf %274, %268 : vector<2x32xf32>
    %276 = arith.mulf %275, %273 : vector<2x32xf32>
    %277 = arith.mulf %268, %219 : vector<2x32xf32>
    %278 = arith.addf %276, %277 : vector<2x32xf32>
    %279 = vector.extract_strided_slice %252 {offsets = [0, 96], sizes = [2, 32], strides = [1, 1]} : vector<2x192xf32> to vector<2x32xf32>
    %280 = vector.extract_strided_slice %250 {offsets = [0, 96], sizes = [2, 32], strides = [1, 1]} : vector<2x192xf32> to vector<2x32xf32>
    %281 = arith.addf %279, %280 : vector<2x32xf32>
    %282 = arith.negf %281 : vector<2x32xf32>
    %283 = math.exp %282 : vector<2x32xf32>
    %cst_51 = arith.constant 1.000000e+00 : f32
    %284 = vector.broadcast %cst_51 : f32 to vector<2x32xf32>
    %285 = arith.addf %284, %283 : vector<2x32xf32>
    %286 = arith.divf %284, %285 : vector<2x32xf32>
    %287 = vector.extract_strided_slice %252 {offsets = [0, 128], sizes = [2, 32], strides = [1, 1]} : vector<2x192xf32> to vector<2x32xf32>
    %288 = vector.extract_strided_slice %250 {offsets = [0, 128], sizes = [2, 32], strides = [1, 1]} : vector<2x192xf32> to vector<2x32xf32>
    %289 = arith.addf %287, %288 : vector<2x32xf32>
    %290 = arith.negf %289 : vector<2x32xf32>
    %291 = math.exp %290 : vector<2x32xf32>
    %cst_52 = arith.constant 1.000000e+00 : f32
    %292 = vector.broadcast %cst_52 : f32 to vector<2x32xf32>
    %293 = arith.addf %292, %291 : vector<2x32xf32>
    %294 = arith.divf %292, %293 : vector<2x32xf32>
    %295 = vector.extract_strided_slice %252 {offsets = [0, 160], sizes = [2, 32], strides = [1, 1]} : vector<2x192xf32> to vector<2x32xf32>
    %296 = vector.extract_strided_slice %250 {offsets = [0, 160], sizes = [2, 32], strides = [1, 1]} : vector<2x192xf32> to vector<2x32xf32>
    %297 = arith.mulf %286, %296 : vector<2x32xf32>
    %298 = arith.addf %295, %297 : vector<2x32xf32>
    %299 = math.tanh %298 : vector<2x32xf32>
    %cst_53 = arith.constant 1.000000e+00 : f32
    %300 = vector.broadcast %cst_53 : f32 to vector<2x32xf32>
    %301 = arith.subf %300, %294 : vector<2x32xf32>
    %302 = arith.mulf %301, %299 : vector<2x32xf32>
    %303 = arith.mulf %294, %245 : vector<2x32xf32>
    %304 = arith.addf %302, %303 : vector<2x32xf32>
    %c8_54 = arith.constant 8 : index
    %c0_55 = arith.constant 0 : index
    %305 = vector.load %arg11[%c8_54, %c0_55] : memref<16x64xf32, #tpu.memory_space<vmem>>, vector<2x32xf32>
    tpu.vector_store %arg11[%c8_54, %c0_55], %278 {strides = array<i32>} : memref<16x64xf32, #tpu.memory_space<vmem>>, vector<2x32xf32>,
    %c6_56 = arith.constant 6 : index
    %c32_57 = arith.constant 32 : index
    %306 = vector.load %arg11[%c6_56, %c32_57] : memref<16x64xf32, #tpu.memory_space<vmem>>, vector<2x32xf32>
    tpu.vector_store %arg11[%c6_56, %c32_57], %304 {strides = array<i32>} : memref<16x64xf32, #tpu.memory_space<vmem>>, vector<2x32xf32>,
    %307 = tpu.concatenate %278, %304 in 1 : vector<2x32xf32>, vector<2x32xf32> -> vector<2x64xf32>
    %cst_58 = arith.constant dense<0.000000e+00> : vector<2x192xf32>
    %308 = tpu.matmul %307, %6, %cst_58 {dimension_numbers = #tpu.dot_dimension_numbers<[1], [0], [0], [1], [0, 0, 1, 1], [], []>} : vector<2x64xf32>, vector<64x192xf32>, vector<2x192xf32> -> vector<2x192xf32>
    %309 = arith.addf %308, %9 : vector<2x192xf32>
    %310 = vector.extract_strided_slice %5 {offsets = [10, 0], sizes = [2, 192], strides = [1, 1]} : vector<16x192xf32> to vector<2x192xf32>
    %311 = vector.extract_strided_slice %5 {offsets = [4, 0], sizes = [2, 192], strides = [1, 1]} : vector<16x192xf32> to vector<2x192xf32>
    %312 = vector.extract_strided_slice %310 {offsets = [0, 0], sizes = [2, 32], strides = [1, 1]} : vector<2x192xf32> to vector<2x32xf32>
    %313 = vector.extract_strided_slice %309 {offsets = [0, 0], sizes = [2, 32], strides = [1, 1]} : vector<2x192xf32> to vector<2x32xf32>
    %314 = arith.addf %312, %313 : vector<2x32xf32>
    %315 = arith.negf %314 : vector<2x32xf32>
    %316 = math.exp %315 : vector<2x32xf32>
    %cst_59 = arith.constant 1.000000e+00 : f32
    %317 = vector.broadcast %cst_59 : f32 to vector<2x32xf32>
    %318 = arith.addf %317, %316 : vector<2x32xf32>
    %319 = arith.divf %317, %318 : vector<2x32xf32>
    %320 = vector.extract_strided_slice %310 {offsets = [0, 32], sizes = [2, 32], strides = [1, 1]} : vector<2x192xf32> to vector<2x32xf32>
    %321 = vector.extract_strided_slice %309 {offsets = [0, 32], sizes = [2, 32], strides = [1, 1]} : vector<2x192xf32> to vector<2x32xf32>
    %322 = arith.addf %320, %321 : vector<2x32xf32>
    %323 = arith.negf %322 : vector<2x32xf32>
    %324 = math.exp %323 : vector<2x32xf32>
    %cst_60 = arith.constant 1.000000e+00 : f32
    %325 = vector.broadcast %cst_60 : f32 to vector<2x32xf32>
    %326 = arith.addf %325, %324 : vector<2x32xf32>
    %327 = arith.divf %325, %326 : vector<2x32xf32>
    %328 = vector.extract_strided_slice %310 {offsets = [0, 64], sizes = [2, 32], strides = [1, 1]} : vector<2x192xf32> to vector<2x32xf32>
    %329 = vector.extract_strided_slice %309 {offsets = [0, 64], sizes = [2, 32], strides = [1, 1]} : vector<2x192xf32> to vector<2x32xf32>
    %330 = arith.mulf %319, %329 : vector<2x32xf32>
    %331 = arith.addf %328, %330 : vector<2x32xf32>
    %332 = math.tanh %331 : vector<2x32xf32>
    %cst_61 = arith.constant 1.000000e+00 : f32
    %333 = vector.broadcast %cst_61 : f32 to vector<2x32xf32>
    %334 = arith.subf %333, %327 : vector<2x32xf32>
    %335 = arith.mulf %334, %332 : vector<2x32xf32>
    %336 = arith.mulf %327, %278 : vector<2x32xf32>
    %337 = arith.addf %335, %336 : vector<2x32xf32>
    %338 = vector.extract_strided_slice %311 {offsets = [0, 96], sizes = [2, 32], strides = [1, 1]} : vector<2x192xf32> to vector<2x32xf32>
    %339 = vector.extract_strided_slice %309 {offsets = [0, 96], sizes = [2, 32], strides = [1, 1]} : vector<2x192xf32> to vector<2x32xf32>
    %340 = arith.addf %338, %339 : vector<2x32xf32>
    %341 = arith.negf %340 : vector<2x32xf32>
    %342 = math.exp %341 : vector<2x32xf32>
    %cst_62 = arith.constant 1.000000e+00 : f32
    %343 = vector.broadcast %cst_62 : f32 to vector<2x32xf32>
    %344 = arith.addf %343, %342 : vector<2x32xf32>
    %345 = arith.divf %343, %344 : vector<2x32xf32>
    %346 = vector.extract_strided_slice %311 {offsets = [0, 128], sizes = [2, 32], strides = [1, 1]} : vector<2x192xf32> to vector<2x32xf32>
    %347 = vector.extract_strided_slice %309 {offsets = [0, 128], sizes = [2, 32], strides = [1, 1]} : vector<2x192xf32> to vector<2x32xf32>
    %348 = arith.addf %346, %347 : vector<2x32xf32>
    %349 = arith.negf %348 : vector<2x32xf32>
    %350 = math.exp %349 : vector<2x32xf32>
    %cst_63 = arith.constant 1.000000e+00 : f32
    %351 = vector.broadcast %cst_63 : f32 to vector<2x32xf32>
    %352 = arith.addf %351, %350 : vector<2x32xf32>
    %353 = arith.divf %351, %352 : vector<2x32xf32>
    %354 = vector.extract_strided_slice %311 {offsets = [0, 160], sizes = [2, 32], strides = [1, 1]} : vector<2x192xf32> to vector<2x32xf32>
    %355 = vector.extract_strided_slice %309 {offsets = [0, 160], sizes = [2, 32], strides = [1, 1]} : vector<2x192xf32> to vector<2x32xf32>
    %356 = arith.mulf %345, %355 : vector<2x32xf32>
    %357 = arith.addf %354, %356 : vector<2x32xf32>
    %358 = math.tanh %357 : vector<2x32xf32>
    %cst_64 = arith.constant 1.000000e+00 : f32
    %359 = vector.broadcast %cst_64 : f32 to vector<2x32xf32>
    %360 = arith.subf %359, %353 : vector<2x32xf32>
    %361 = arith.mulf %360, %358 : vector<2x32xf32>
    %362 = arith.mulf %353, %304 : vector<2x32xf32>
    %363 = arith.addf %361, %362 : vector<2x32xf32>
    %c10_65 = arith.constant 10 : index
    %c0_66 = arith.constant 0 : index
    %364 = vector.load %arg11[%c10_65, %c0_66] : memref<16x64xf32, #tpu.memory_space<vmem>>, vector<2x32xf32>
    tpu.vector_store %arg11[%c10_65, %c0_66], %337 {strides = array<i32>} : memref<16x64xf32, #tpu.memory_space<vmem>>, vector<2x32xf32>,
    %c4_67 = arith.constant 4 : index
    %c32_68 = arith.constant 32 : index
    %365 = vector.load %arg11[%c4_67, %c32_68] : memref<16x64xf32, #tpu.memory_space<vmem>>, vector<2x32xf32>
    tpu.vector_store %arg11[%c4_67, %c32_68], %363 {strides = array<i32>} : memref<16x64xf32, #tpu.memory_space<vmem>>, vector<2x32xf32>,
    %366 = tpu.concatenate %337, %363 in 1 : vector<2x32xf32>, vector<2x32xf32> -> vector<2x64xf32>
    %cst_69 = arith.constant dense<0.000000e+00> : vector<2x192xf32>
    %367 = tpu.matmul %366, %6, %cst_69 {dimension_numbers = #tpu.dot_dimension_numbers<[1], [0], [0], [1], [0, 0, 1, 1], [], []>} : vector<2x64xf32>, vector<64x192xf32>, vector<2x192xf32> -> vector<2x192xf32>
    %368 = arith.addf %367, %9 : vector<2x192xf32>
    %369 = vector.extract_strided_slice %5 {offsets = [12, 0], sizes = [2, 192], strides = [1, 1]} : vector<16x192xf32> to vector<2x192xf32>
    %370 = vector.extract_strided_slice %5 {offsets = [2, 0], sizes = [2, 192], strides = [1, 1]} : vector<16x192xf32> to vector<2x192xf32>
    %371 = vector.extract_strided_slice %369 {offsets = [0, 0], sizes = [2, 32], strides = [1, 1]} : vector<2x192xf32> to vector<2x32xf32>
    %372 = vector.extract_strided_slice %368 {offsets = [0, 0], sizes = [2, 32], strides = [1, 1]} : vector<2x192xf32> to vector<2x32xf32>
    %373 = arith.addf %371, %372 : vector<2x32xf32>
    %374 = arith.negf %373 : vector<2x32xf32>
    %375 = math.exp %374 : vector<2x32xf32>
    %cst_70 = arith.constant 1.000000e+00 : f32
    %376 = vector.broadcast %cst_70 : f32 to vector<2x32xf32>
    %377 = arith.addf %376, %375 : vector<2x32xf32>
    %378 = arith.divf %376, %377 : vector<2x32xf32>
    %379 = vector.extract_strided_slice %369 {offsets = [0, 32], sizes = [2, 32], strides = [1, 1]} : vector<2x192xf32> to vector<2x32xf32>
    %380 = vector.extract_strided_slice %368 {offsets = [0, 32], sizes = [2, 32], strides = [1, 1]} : vector<2x192xf32> to vector<2x32xf32>
    %381 = arith.addf %379, %380 : vector<2x32xf32>
    %382 = arith.negf %381 : vector<2x32xf32>
    %383 = math.exp %382 : vector<2x32xf32>
    %cst_71 = arith.constant 1.000000e+00 : f32
    %384 = vector.broadcast %cst_71 : f32 to vector<2x32xf32>
    %385 = arith.addf %384, %383 : vector<2x32xf32>
    %386 = arith.divf %384, %385 : vector<2x32xf32>
    %387 = vector.extract_strided_slice %369 {offsets = [0, 64], sizes = [2, 32], strides = [1, 1]} : vector<2x192xf32> to vector<2x32xf32>
    %388 = vector.extract_strided_slice %368 {offsets = [0, 64], sizes = [2, 32], strides = [1, 1]} : vector<2x192xf32> to vector<2x32xf32>
    %389 = arith.mulf %378, %388 : vector<2x32xf32>
    %390 = arith.addf %387, %389 : vector<2x32xf32>
    %391 = math.tanh %390 : vector<2x32xf32>
    %cst_72 = arith.constant 1.000000e+00 : f32
    %392 = vector.broadcast %cst_72 : f32 to vector<2x32xf32>
    %393 = arith.subf %392, %386 : vector<2x32xf32>
    %394 = arith.mulf %393, %391 : vector<2x32xf32>
    %395 = arith.mulf %386, %337 : vector<2x32xf32>
    %396 = arith.addf %394, %395 : vector<2x32xf32>
    %397 = vector.extract_strided_slice %370 {offsets = [0, 96], sizes = [2, 32], strides = [1, 1]} : vector<2x192xf32> to vector<2x32xf32>
    %398 = vector.extract_strided_slice %368 {offsets = [0, 96], sizes = [2, 32], strides = [1, 1]} : vector<2x192xf32> to vector<2x32xf32>
    %399 = arith.addf %397, %398 : vector<2x32xf32>
    %400 = arith.negf %399 : vector<2x32xf32>
    %401 = math.exp %400 : vector<2x32xf32>
    %cst_73 = arith.constant 1.000000e+00 : f32
    %402 = vector.broadcast %cst_73 : f32 to vector<2x32xf32>
    %403 = arith.addf %402, %401 : vector<2x32xf32>
    %404 = arith.divf %402, %403 : vector<2x32xf32>
    %405 = vector.extract_strided_slice %370 {offsets = [0, 128], sizes = [2, 32], strides = [1, 1]} : vector<2x192xf32> to vector<2x32xf32>
    %406 = vector.extract_strided_slice %368 {offsets = [0, 128], sizes = [2, 32], strides = [1, 1]} : vector<2x192xf32> to vector<2x32xf32>
    %407 = arith.addf %405, %406 : vector<2x32xf32>
    %408 = arith.negf %407 : vector<2x32xf32>
    %409 = math.exp %408 : vector<2x32xf32>
    %cst_74 = arith.constant 1.000000e+00 : f32
    %410 = vector.broadcast %cst_74 : f32 to vector<2x32xf32>
    %411 = arith.addf %410, %409 : vector<2x32xf32>
    %412 = arith.divf %410, %411 : vector<2x32xf32>
    %413 = vector.extract_strided_slice %370 {offsets = [0, 160], sizes = [2, 32], strides = [1, 1]} : vector<2x192xf32> to vector<2x32xf32>
    %414 = vector.extract_strided_slice %368 {offsets = [0, 160], sizes = [2, 32], strides = [1, 1]} : vector<2x192xf32> to vector<2x32xf32>
    %415 = arith.mulf %404, %414 : vector<2x32xf32>
    %416 = arith.addf %413, %415 : vector<2x32xf32>
    %417 = math.tanh %416 : vector<2x32xf32>
    %cst_75 = arith.constant 1.000000e+00 : f32
    %418 = vector.broadcast %cst_75 : f32 to vector<2x32xf32>
    %419 = arith.subf %418, %412 : vector<2x32xf32>
    %420 = arith.mulf %419, %417 : vector<2x32xf32>
    %421 = arith.mulf %412, %363 : vector<2x32xf32>
    %422 = arith.addf %420, %421 : vector<2x32xf32>
    %c12_76 = arith.constant 12 : index
    %c0_77 = arith.constant 0 : index
    %423 = vector.load %arg11[%c12_76, %c0_77] : memref<16x64xf32, #tpu.memory_space<vmem>>, vector<2x32xf32>
    tpu.vector_store %arg11[%c12_76, %c0_77], %396 {strides = array<i32>} : memref<16x64xf32, #tpu.memory_space<vmem>>, vector<2x32xf32>,
    %c2_78 = arith.constant 2 : index
    %c32_79 = arith.constant 32 : index
    %424 = vector.load %arg11[%c2_78, %c32_79] : memref<16x64xf32, #tpu.memory_space<vmem>>, vector<2x32xf32>
    tpu.vector_store %arg11[%c2_78, %c32_79], %422 {strides = array<i32>} : memref<16x64xf32, #tpu.memory_space<vmem>>, vector<2x32xf32>,
    %425 = tpu.concatenate %396, %422 in 1 : vector<2x32xf32>, vector<2x32xf32> -> vector<2x64xf32>
    %cst_80 = arith.constant dense<0.000000e+00> : vector<2x192xf32>
    %426 = tpu.matmul %425, %6, %cst_80 {dimension_numbers = #tpu.dot_dimension_numbers<[1], [0], [0], [1], [0, 0, 1, 1], [], []>} : vector<2x64xf32>, vector<64x192xf32>, vector<2x192xf32> -> vector<2x192xf32>
    %427 = arith.addf %426, %9 : vector<2x192xf32>
    %428 = vector.extract_strided_slice %5 {offsets = [14, 0], sizes = [2, 192], strides = [1, 1]} : vector<16x192xf32> to vector<2x192xf32>
    %429 = vector.extract_strided_slice %5 {offsets = [0, 0], sizes = [2, 192], strides = [1, 1]} : vector<16x192xf32> to vector<2x192xf32>
    %430 = vector.extract_strided_slice %428 {offsets = [0, 0], sizes = [2, 32], strides = [1, 1]} : vector<2x192xf32> to vector<2x32xf32>
    %431 = vector.extract_strided_slice %427 {offsets = [0, 0], sizes = [2, 32], strides = [1, 1]} : vector<2x192xf32> to vector<2x32xf32>
    %432 = arith.addf %430, %431 : vector<2x32xf32>
    %433 = arith.negf %432 : vector<2x32xf32>
    %434 = math.exp %433 : vector<2x32xf32>
    %cst_81 = arith.constant 1.000000e+00 : f32
    %435 = vector.broadcast %cst_81 : f32 to vector<2x32xf32>
    %436 = arith.addf %435, %434 : vector<2x32xf32>
    %437 = arith.divf %435, %436 : vector<2x32xf32>
    %438 = vector.extract_strided_slice %428 {offsets = [0, 32], sizes = [2, 32], strides = [1, 1]} : vector<2x192xf32> to vector<2x32xf32>
    %439 = vector.extract_strided_slice %427 {offsets = [0, 32], sizes = [2, 32], strides = [1, 1]} : vector<2x192xf32> to vector<2x32xf32>
    %440 = arith.addf %438, %439 : vector<2x32xf32>
    %441 = arith.negf %440 : vector<2x32xf32>
    %442 = math.exp %441 : vector<2x32xf32>
    %cst_82 = arith.constant 1.000000e+00 : f32
    %443 = vector.broadcast %cst_82 : f32 to vector<2x32xf32>
    %444 = arith.addf %443, %442 : vector<2x32xf32>
    %445 = arith.divf %443, %444 : vector<2x32xf32>
    %446 = vector.extract_strided_slice %428 {offsets = [0, 64], sizes = [2, 32], strides = [1, 1]} : vector<2x192xf32> to vector<2x32xf32>
    %447 = vector.extract_strided_slice %427 {offsets = [0, 64], sizes = [2, 32], strides = [1, 1]} : vector<2x192xf32> to vector<2x32xf32>
    %448 = arith.mulf %437, %447 : vector<2x32xf32>
    %449 = arith.addf %446, %448 : vector<2x32xf32>
    %450 = math.tanh %449 : vector<2x32xf32>
    %cst_83 = arith.constant 1.000000e+00 : f32
    %451 = vector.broadcast %cst_83 : f32 to vector<2x32xf32>
    %452 = arith.subf %451, %445 : vector<2x32xf32>
    %453 = arith.mulf %452, %450 : vector<2x32xf32>
    %454 = arith.mulf %445, %396 : vector<2x32xf32>
    %455 = arith.addf %453, %454 : vector<2x32xf32>
    %456 = vector.extract_strided_slice %429 {offsets = [0, 96], sizes = [2, 32], strides = [1, 1]} : vector<2x192xf32> to vector<2x32xf32>
    %457 = vector.extract_strided_slice %427 {offsets = [0, 96], sizes = [2, 32], strides = [1, 1]} : vector<2x192xf32> to vector<2x32xf32>
    %458 = arith.addf %456, %457 : vector<2x32xf32>
    %459 = arith.negf %458 : vector<2x32xf32>
    %460 = math.exp %459 : vector<2x32xf32>
    %cst_84 = arith.constant 1.000000e+00 : f32
    %461 = vector.broadcast %cst_84 : f32 to vector<2x32xf32>
    %462 = arith.addf %461, %460 : vector<2x32xf32>
    %463 = arith.divf %461, %462 : vector<2x32xf32>
    %464 = vector.extract_strided_slice %429 {offsets = [0, 128], sizes = [2, 32], strides = [1, 1]} : vector<2x192xf32> to vector<2x32xf32>
    %465 = vector.extract_strided_slice %427 {offsets = [0, 128], sizes = [2, 32], strides = [1, 1]} : vector<2x192xf32> to vector<2x32xf32>
    %466 = arith.addf %464, %465 : vector<2x32xf32>
    %467 = arith.negf %466 : vector<2x32xf32>
    %468 = math.exp %467 : vector<2x32xf32>
    %cst_85 = arith.constant 1.000000e+00 : f32
    %469 = vector.broadcast %cst_85 : f32 to vector<2x32xf32>
    %470 = arith.addf %469, %468 : vector<2x32xf32>
    %471 = arith.divf %469, %470 : vector<2x32xf32>
    %472 = vector.extract_strided_slice %429 {offsets = [0, 160], sizes = [2, 32], strides = [1, 1]} : vector<2x192xf32> to vector<2x32xf32>
    %473 = vector.extract_strided_slice %427 {offsets = [0, 160], sizes = [2, 32], strides = [1, 1]} : vector<2x192xf32> to vector<2x32xf32>
    %474 = arith.mulf %463, %473 : vector<2x32xf32>
    %475 = arith.addf %472, %474 : vector<2x32xf32>
    %476 = math.tanh %475 : vector<2x32xf32>
    %cst_86 = arith.constant 1.000000e+00 : f32
    %477 = vector.broadcast %cst_86 : f32 to vector<2x32xf32>
    %478 = arith.subf %477, %471 : vector<2x32xf32>
    %479 = arith.mulf %478, %476 : vector<2x32xf32>
    %480 = arith.mulf %471, %422 : vector<2x32xf32>
    %481 = arith.addf %479, %480 : vector<2x32xf32>
    %c14_87 = arith.constant 14 : index
    %c0_88 = arith.constant 0 : index
    %482 = vector.load %arg11[%c14_87, %c0_88] : memref<16x64xf32, #tpu.memory_space<vmem>>, vector<2x32xf32>
    tpu.vector_store %arg11[%c14_87, %c0_88], %455 {strides = array<i32>} : memref<16x64xf32, #tpu.memory_space<vmem>>, vector<2x32xf32>,
    %c0_89 = arith.constant 0 : index
    %c32_90 = arith.constant 32 : index
    %483 = vector.load %arg11[%c0_89, %c32_90] : memref<16x64xf32, #tpu.memory_space<vmem>>, vector<2x32xf32>
    tpu.vector_store %arg11[%c0_89, %c32_90], %481 {strides = array<i32>} : memref<16x64xf32, #tpu.memory_space<vmem>>, vector<2x32xf32>,
    %c0_91 = arith.constant 0 : index
    %c0_92 = arith.constant 0 : index
    %484 = vector.load %arg11[%c0_91, %c0_92] : memref<16x64xf32, #tpu.memory_space<vmem>>, vector<16x64xf32>
    %c0_93 = arith.constant 0 : index
    %c0_94 = arith.constant 0 : index
    %485 = vector.load %arg6[%c0_93, %c0_94] : memref<64x64xf32, #tpu.memory_space<vmem>>, vector<64x64xf32>
    %cst_95 = arith.constant dense<0.000000e+00> : vector<16x64xf32>
    %486 = tpu.matmul %484, %485, %cst_95 {dimension_numbers = #tpu.dot_dimension_numbers<[1], [0], [0], [1], [0, 0, 1, 1], [], []>} : vector<16x64xf32>, vector<64x64xf32>, vector<16x64xf32> -> vector<16x64xf32>
    %487 = math.tanh %486 : vector<16x64xf32>
    %c0_96 = arith.constant 0 : index
    %c0_97 = arith.constant 0 : index
    %488 = vector.load %arg7[%c0_96, %c0_97] : memref<1x64xf32, #tpu.memory_space<vmem>>, vector<1x64xf32>
    %489 = vector.broadcast %488 : vector<1x64xf32> to vector<16x64xf32>
    %490 = arith.mulf %487, %489 : vector<16x64xf32>
    %cst_98 = arith.constant dense<0.000000e+00> : vector<16xf32>
    %491 = vector.multi_reduction <add>, %490, %cst_98 [1] : vector<16x64xf32> to vector<16xf32>
    %492 = vector.shape_cast %491 : vector<16xf32> to vector<16x1xf32>
    %493 = vector.shape_cast %492 : vector<16x1xf32> to vector<1x16x1xf32>
    %cst_99 = arith.constant dense<0xFF800000> : vector<1xf32>
    %494 = vector.multi_reduction <maximumf>, %493, %cst_99 [1, 2] : vector<1x16x1xf32> to vector<1xf32>
    %495 = vector.shape_cast %494 : vector<1xf32> to vector<1x1x1xf32>
    %496 = vector.extract %495[0, 0, 0] : f32 from vector<1x1x1xf32>
    %497 = vector.broadcast %496 : f32 to vector<1x1xf32>
    %498 = vector.broadcast %497 : vector<1x1xf32> to vector<16x1xf32>
    %499 = arith.subf %492, %498 : vector<16x1xf32>
    %500 = math.exp %499 : vector<16x1xf32>
    %c0_100 = arith.constant 0 : index
    %c0_101 = arith.constant 0 : index
    %501 = vector.load %arg5[%c0_100, %c0_101] : memref<2x16xf32, #tpu.memory_space<vmem>>, vector<2x16xf32>
    %502 = vector.broadcast %500 : vector<16x1xf32> to vector<16x64xf32>
    %503 = arith.mulf %484, %502 : vector<16x64xf32>
    %cst_102 = arith.constant dense<0.000000e+00> : vector<2x64xf32>
    %504 = tpu.matmul %501, %503, %cst_102 {dimension_numbers = #tpu.dot_dimension_numbers<[1], [0], [0], [1], [0, 0, 1, 1], [], []>} : vector<2x16xf32>, vector<16x64xf32>, vector<2x64xf32> -> vector<2x64xf32>
    %c0_103 = arith.constant 0 : index
    %c0_104 = arith.constant 0 : index
    %505 = vector.load %arg5[%c0_103, %c0_104] : memref<2x16xf32, #tpu.memory_space<vmem>>, vector<2x16xf32>
    %cst_105 = arith.constant dense<0.000000e+00> : vector<2x1xf32>
    %506 = tpu.matmul %505, %500, %cst_105 {dimension_numbers = #tpu.dot_dimension_numbers<[1], [0], [0], [1], [0, 0, 1, 1], [], []>} : vector<2x16xf32>, vector<16x1xf32>, vector<2x1xf32> -> vector<2x1xf32>
    %507 = tpu.reciprocal %506 {approx = true} : vector<2x1xf32> -> vector<2x1xf32>
    %508 = vector.broadcast %507 : vector<2x1xf32> to vector<2x64xf32>
    %509 = arith.mulf %504, %508 : vector<2x64xf32>
    %c0_106 = arith.constant 0 : index
    %c0_107 = arith.constant 0 : index
    %510 = vector.load %arg8[%c0_106, %c0_107] : memref<64x4xf32, #tpu.memory_space<vmem>>, vector<64x4xf32>
    %cst_108 = arith.constant dense<0.000000e+00> : vector<2x4xf32>
    %511 = tpu.matmul %509, %510, %cst_108 {dimension_numbers = #tpu.dot_dimension_numbers<[1], [0], [0], [1], [0, 0, 1, 1], [], []>} : vector<2x64xf32>, vector<64x4xf32>, vector<2x4xf32> -> vector<2x4xf32>
    %c0_109 = arith.constant 0 : index
    %c0_110 = arith.constant 0 : index
    %512 = vector.load %arg9[%c0_109, %c0_110] : memref<1x4xf32, #tpu.memory_space<vmem>>, vector<1x4xf32>
    %513 = vector.broadcast %512 : vector<1x4xf32> to vector<2x4xf32>
    %514 = arith.addf %511, %513 : vector<2x4xf32>
    %c0_111 = arith.constant 0 : index
    %c0_112 = arith.constant 0 : index
    %515 = vector.load %arg10[%c0_111, %c0_112] : memref<2x4xf32, #tpu.memory_space<vmem>>, vector<2x4xf32>
    tpu.vector_store %arg10[%c0_111, %c0_112], %514 {strides = array<i32>} : memref<2x4xf32, #tpu.memory_space<vmem>>, vector<2x4xf32>,
    return
  }
}

</mosaic_0001>

<bundles_post_ra>
// kernel: tpu_custom_call.1
= control target key start
LH: loop header
LB: loop body
LE: loop exit
PB: predicated region body
PF: predicated region fallthrough
CT: control target
= control target key end

     0   :  { %15 = vsyncpa [#allocation4], 0  ;;  %s2858_s0 = inlined_call_operand.vmem [shape: f32[16,16], index: 0, kind: input, shape index: {}]   ;;  %s2859_s1 = inlined_call_operand.hbm [shape: f32[16,192], index: 1, kind: input, shape index: {}]   ;;  %s2860_s2 = inlined_call_operand.vmem [shape: f32[1,192], index: 2, kind: input, shape index: {}]   ;;  %s2861_s3 = inlined_call_operand.hbm [shape: f32[64,192], index: 3, kind: input, shape index: {}]   ;;  %s2862_s4 = inlined_call_operand.vmem [shape: f32[1,192], index: 4, kind: input, shape index: {}]   ;;  %s2863_s5 = inlined_call_operand.vmem [shape: f32[2,16], index: 5, kind: input, shape index: {}]   ;;  %s2864_s6 = inlined_call_operand.vmem [shape: f32[64,64], index: 6, kind: input, shape index: {}]   ;;  %s2865_s7 = inlined_call_operand.vmem [shape: f32[1,64], index: 7, kind: input, shape index: {}]   ;;  %s2866_s8 = inlined_call_operand.vmem [shape: f32[64,4], index: 8, kind: input, shape index: {}]   ;;  %s2867_s9 = inlined_call_operand.vmem [shape: f32[1,4], index: 9, kind: input, shape index: {}]   ;;  %s2868_s10 = inlined_call_operand.hbm [shape: f32[2,4], index: 10, kind: output, shape index: {}]  }
   0x1   :  { %16 = vsyncpa [#allocation7], 0 }
   0x2   :  { %17 = vsyncpa [#allocation5], 0  ;;  %s2339_s13 = smov [#allocation3]   ;;  %s2267_s17 = scalar_lea.hbm %s2859_s1, 512 }
   0x3   :  { %s25_s14 = sshll.u32 %s2339_s13, 4  ;;  %p2268_p0 = scmp.ne.s32.totalorder %s2859_s1, %s2267_s17  ;;  %s26_s14 = int_to_ptr.vmem [resolvable:$true] %s25_s14 }
   0x4   :  { %p2271_p1 = scmp.lt.u32.totalorder %s2267_s17, %s2859_s1 }
   0x6   :  { %p2273_p2 = pnand %p2271_p1, %p2268_p0 }
   0x8   :  { %2276 = shalt.err (!%p2273_p2)
}
   0x9   :  { %s2277_s22 = scalar_lea.vmem %s26_s14, 512  ;;  %p2282_p4 = scmp.lt.s32.totalorder %s26_s14, %s26_s14 }
   0xa   :  { %p2278_p3 = scmp.ne.s32.totalorder %s26_s14, %s2277_s22  ;;  %p2283_p5 = scmp.lt.s32.totalorder %s2277_s22, %s2277_s22 }
   0xc   :  { %p2284_p6 = por %p2283_p5, %p2282_p4 }
   0xe   :  { %p2285_p7 = pnand %p2284_p6, %p2278_p3 }
  0x10   :  { %2288 = shalt.err (!%p2285_p7)
}
  0x11   :  { %s2340_s23 = smov 256   ;;  %s2341_s24 = smov 16  }
  0x12   :  { %31 = dma.hbm_to_vmem [thread:$0]  %s2859_s1, 512, %s26_s14, [#allocation4], %s2340_s23, %s2340_s23, %s2341_s24  }
  0x13   :  { %s2342_s27 = smov [#allocation6]   ;;  %s2289_s11 = scalar_lea.hbm %s2861_s3, 2048 }
  0x14   :  { %s39_s28 = sshll.u32 %s2342_s27, 4  ;;  %p2290_p8 = scmp.ne.s32.totalorder %s2861_s3, %s2289_s11  ;;  %s40_s28 = int_to_ptr.vmem [resolvable:$true] %s39_s28 }
  0x15   :  { %p2293_p9 = scmp.lt.u32.totalorder %s2289_s11, %s2861_s3 }
  0x17   :  { %p2295_p10 = pnand %p2293_p9, %p2290_p8 }
  0x19   :  { %2298 = shalt.err (!%p2295_p10)
}
  0x1a   :  { %s2299_s17 = scalar_lea.vmem %s40_s28, 2048  ;;  %p2304_p12 = scmp.lt.s32.totalorder %s40_s28, %s40_s28 }
  0x1b   :  { %p2300_p11 = scmp.ne.s32.totalorder %s40_s28, %s2299_s17  ;;  %p2305_p13 = scmp.lt.s32.totalorder %s2299_s17, %s2299_s17 }
  0x1d   :  { %p2306_p0 = por %p2305_p13, %p2304_p12 }
  0x1f   :  { %p2307_p1 = pnand %p2306_p0, %p2300_p11 }
  0x21   :  { %2310 = shalt.err (!%p2307_p1)
}
  0x22   :  { %45 = dma.hbm_to_vmem [thread:$0]  %s2861_s3, 2048, %s40_s28, [#allocation7], %s2340_s23, %s2340_s23, %s2341_s24  }
  0x23   :  { %2333 = dma.done.wait [#allocation4], 512  }
  0x24   :  { %2334 = vsyncadd [#allocation4], 4294966784 }
  0x25   :  { %2335 = dma.done.wait [#allocation7], 2048  }
  0x26   :  { %2336 = vsyncadd [#allocation7], 4294965248  ;;  %v2343_v0 = vmov 0.0   ;;  %v67_v1 = vld [vmem:[#allocation3 + $0x8] sm:$0xff]  ;;  %v69_v2 = vld [vmem:[#allocation3 + $0x18] sm:$0xff]  ;;  %vm82_vm0 = vcmask 130048   ;;  %v72_v33 = vlaneseq }
  0x27   :  { %153 = vmatprep.mubr.f32.mxu1 %v2343_v0  ;;  %417 = vmatprep.mubr.f32.mxu0 %v2343_v0  ;;  %v66_v3 = vld [vmem:[#allocation3] sm:$0xff]  ;;  %v1948_v4 = vpack.c.bf16 %v69_v2, %v67_v1  ;;  %v68_v5 = vld [vmem:[#allocation3 + $0x10] sm:$0xff]  ;;  %v167_v6 = vld [vmem:[#allocation6 + $0x8] sm:$0xff]  ;;  %s2346_s24 = smov 32   ;;  %vm336_vm1 = vcmask 254976   ;;  %vm348_vm2 = vcmask 261120  }
  0x28   :  { %v1950_v7 = vpack.c.bf16 %v68_v5, %v66_v3  ;;  %v169_v8 = vld [vmem:[#allocation6 + $0x18] sm:$0xff]  ;;  %v166_v9 = vld [vmem:[#allocation6] sm:$0xff]  ;;  %v168_v10 = vld [vmem:[#allocation6 + $0x10] sm:$0xff]  ;;  %v73_v34 = vshrl.u32 %v72_v33, 7  ;;  %vm194_vm3 = vcmask 523264   ;;  %vm497_vm4 = vcmask 257026  }
  0x29   :  { %1949 = vmatprep.subr.bf16.mxu1 %v1948_v4  ;;  %v2432_v11 = vpack.c.bf16 %v169_v8, %v167_v6  ;;  %v171_v12 = vld [vmem:[#allocation6 + $0x28] sm:$0xff]  ;;  %v173_v13 = vld [vmem:[#allocation6 + $0x38] sm:$0xff]  ;;  %v64_v14 = vld [vmem:[%s2858_s0] sm:$0xff]  ;;  %v2437_v15 = vpack.c.bf16 %v168_v10, %v166_v9  ;;  %vm657_vm5 = vcmask 259076   ;;  %vm814_vm6 = vcmask 261126  }
  0x2a   :  { %1951 = vmatpush1.bf16.msra.mxu1 %v1950_v7  ;;  %v2440_v16 = vpack.c.bf16 %v173_v13, %v171_v12  ;;  %v170_v17 = vld [vmem:[#allocation6 + $0x20] sm:$0xff]  ;;  %v172_v18 = vld [vmem:[#allocation6 + $0x30] sm:$0xff]  ;;  %v175_v19 = vld [vmem:[#allocation6 + $0x48] sm:$0xff]  ;;  %v78_v35 = vsub.s32 1, %v73_v34  ;;  %v74_v48 = vsub.s32 0, %v73_v34  ;;  %vm342_vm7 = vcmask 523526  }
  0x2b   :  { %1953 = vmatprep.subr.bf16.mxu1 %v2432_v11  ;;  %1969 = vmatprep.subr.bf16.mxu0 %v2432_v11  ;;  %v177_v20 = vld [vmem:[#allocation6 + $0x58] sm:$0xff]  ;;  %v2447_v21 = vpack.c.bf16 %v172_v18, %v170_v17  ;;  %v174_v24 = vld [vmem:[#allocation6 + $0x40] sm:$0xff]  ;;  %v176_v25 = vld [vmem:[#allocation6 + $0x50] sm:$0xff]  ;;  %vm503_vm8 = vcmask 521476   ;;  %vm663_vm9 = vcmask 519426   ;;  %vm820_vm10 = vcmask 517376  }
  0x2c   :  { %1971 = vmatpush1.bf16.msra.mxu0 %v2437_v15  ;;  %v65_v22 = vld [vmem:[%s2858_s0 + $0x8] sm:$0xff]  ;;  %v2454_v23 = vpack.c.bf16 %v177_v20, %v175_v19  ;;  %v179_v26 = vld [vmem:[#allocation6 + $0x68] sm:$0xff]  ;;  %v2460_v28 = vpack.c.bf16 %v176_v25, %v174_v24  ;;  %v178_v30 = vld [vmem:[#allocation6 + $0x60] sm:$0xff]  ;;  %vm2348_vm11 = vmmov 0   ;;  %vm1813_vm12 = vcmask 25600  }
  0x2d   :  { %1831 = vmatmul.mubr.msk.f32.vlgmr.msra.gmra.mrb[0].mxu1 %vm82_vm0, %v64_v14  ;;  %1973 = vmatprep.subr.bf16.mxu0 %v2440_v16  ;;  %v181_v27 = vld [vmem:[#allocation6 + $0x78] sm:$0xff]  ;;  %v180_v31 = vld [vmem:[#allocation6 + $0x70] sm:$0xff] }
  0x2e   :  { %1955 = vmatpush1.bf16.msra.mxu1 %v2437_v15  ;;  %159 = vmatprep.mubr.f32.mxu1 %v2343_v0  ;;  %v2464_v29 = vpack.c.bf16 %v181_v27, %v179_v26  ;;  %v2469_v32 = vpack.c.bf16 %v180_v31, %v178_v30  ;;  %v70_v36 = vld [vmem:[%s2860_s2] sm:$0x3]  ;;  %s2344_s2 = smov 64  }
  0x2f   :  { %1957 = vmatprep.subr.bf16.mxu1 %v2440_v16  ;;  %v79_v37 = vrot.slane %v70_v36, %v78_v35  ;;  %v182_v44 = vld [vmem:[%s2862_s4] sm:$0x3]  ;;  %v75_v53 = vrot.slane %v70_v36, %v74_v48  ;;  %s2345_s4 = smov 96  }
  0x30   :  { %1975 = vmatpush1.bf16.msra.mxu0 %v2447_v21  ;;  %v2496_v45 = vrot.slane %v182_v44, %v78_v35  ;;  %v2499_v50 = vrot.slane %v182_v44, %v74_v48 }
  0x31   :  { %1832 = vmatmul.mubr.msk.f32.gmra.mrb[2].mxu1 %vm82_vm0, %v65_v22  ;;  %1977 = vmatprep.subr.bf16.mxu0 %v2454_v23 }
  0x32   :  { %1959 = vmatpush1.bf16.msra.mxu1 %v2447_v21  ;;  %262 = vmatprep.mubr.f32.mxu1 %v2343_v0 }
  0x33   :  { %1961 = vmatprep.subr.bf16.mxu1 %v2454_v23 }
  0x34   :  { %1979 = vmatpush1.bf16.msra.mxu0 %v2460_v28 }
  0x35   :  { %1981 = vmatprep.subr.bf16.mxu0 %v2464_v29 }
  0x36   :  { %1963 = vmatpush1.bf16.msra.mxu1 %v2460_v28 }
  0x37   :  { %1965 = vmatprep.subr.bf16.mxu1 %v2464_v29 }
  0x38   :  { %1983 = vmatpush1.bf16.msra.mxu0 %v2469_v32 }
  0x39   :  { %2001 = vmatprep.subr.bf16.mxu0 %v2432_v11 }
  0x3a   :  { %1967 = vmatpush1.bf16.msra.mxu1 %v2469_v32 }
  0x3b   :  { %1985 = vmatprep.subr.bf16.mxu1 %v2432_v11 }
  0x3d   :  { %263 = vmatmul.mubr.f32.vlgmr.msra.gmra.mrb[4].mxu1 %v2343_v0 }
  0x3e   :  { %1987 = vmatpush1.bf16.msra.mxu1 %v2437_v15  ;;  %578 = vmatprep.mubr.f32.mxu1 %v2343_v0 }
  0x3f   :  { %1989 = vmatprep.subr.bf16.mxu1 %v2440_v16 }
  0x42   :  { %1991 = vmatpush1.bf16.msra.mxu1 %v2447_v21 }
  0x43   :  { %1993 = vmatprep.subr.bf16.mxu1 %v2454_v23 }
  0x46   :  { %1995 = vmatpush1.bf16.msra.mxu1 %v2460_v28 }
  0x47   :  { %1997 = vmatprep.subr.bf16.mxu1 %v2464_v29 }
  0x4a   :  { %1999 = vmatpush1.bf16.msra.mxu1 %v2469_v32 }
  0x4b   :  { %2017 = vmatprep.subr.bf16.mxu1 %v2432_v11 }
 0x100   :  { %v155_v38 = vpop.f32.mrb[0].mxu1 }
 0x101   :  { %v157_v39 = vpop.f32.mrb[1].mxu1  ;;  %v2507_v57 = vadd.f32 %v155_v38, %v75_v53 }
 0x102   :  { %v2489_v40 = vadd.f32 %v157_v39, %v79_v37 }
 0x104   :  { %v161_v41 = vpop.f32.mrb[2].mxu1 }
 0x105   :  { %v163_v42 = vpop.f32.mrb[3].mxu1  ;;  %v2504_v55 = vadd.f32 %v161_v41, %v75_v53 }
 0x106   :  { %v2491_v43 = vadd.f32 %v163_v42, %v79_v37 }
 0x110   :  { %v264_v46 = vpop.f32.mrb[4].mxu1 }
 0x111   :  { %v266_v47 = vpop.f32.mrb[5].mxu1  ;;  %v265_v52 = vadd.f32 %v264_v46, %v2499_v50 }
 0x112   :  { %v267_v49 = vadd.f32 %v266_v47, %v2496_v45 }
 0x113   :  { %v295_v54 = vrot.slane %v265_v52, 2  ;;  %v269_v58 = vadd.f32 %v265_v52, %v2507_v57 }
 0x114   :  { %v305_v51 = vrot.slane %v267_v49, 2 }
 0x115   :  { %v297_v56 = vadd.f32 %v295_v54, %v2504_v55  ;;  %v1833_v60 = vmul.f32 -1.442695, %v269_v58 }
 0x116   :  { %314 = vrot.lane.b32.xlu0 %v305_v51, %s2344_s2  ;;  %v307_v17 = vadd.f32 %v305_v51, %v2491_v43 }
 0x117   :  { %v1834_v59 = vmul.f32 -1.442695, %v297_v56 }
 0x118   :  { %v1835_v18 = vmul.f32 -1.442695, %v307_v17 }
 0x119   :  { %2129 = vpow2.f32 %v1834_v59 }
 0x11a   :  { %277 = vrot.lane.b32.xlu0 %v265_v52, %s2344_s2  ;;  %2131 = vpow2.f32 %v1833_v60 }
 0x123   :  { %v2130_v61 = vpop.eup %2129 }
 0x124   :  { %v301_v62 = vadd.f32 1.0, %v2130_v61  ;;  %v2132_v63 = vpop.eup %2131 }
 0x125   :  { %v273_v1 = vadd.f32 1.0, %v2132_v63 }
 0x126   :  { %2133 = vrcp.f32 %v301_v62 }
 0x127   :  { %2135 = vrcp.f32 %v273_v1 }
 0x130   :  { %v2134_v2 = vpop.eup %2133 }
 0x131   :  { %v2136_v5 = vpop.eup %2135 }
 0x132   :  { %v287_v31 = vsub.f32 1.0, %v2136_v5  ;;  %v293_v34 = vmul.f32 0.0, %v2136_v5 }
 0x188   :  { %v315_v3 = vpop.permute.xlu0 %314 }
 0x189   :  { %v317_v4 = vmul.f32 %v2134_v2, %v315_v3 }
 0x18b   :  { %319 = vrot.lane.b32.xlu1 %v317_v4, %s2344_s2 }
 0x18c   :  { %v278_v6 = vpop.permute.xlu0 %277 }
 0x18d   :  { %v280_v7 = vmul.f32 %v2136_v5, %v278_v6 }
 0x18f   :  { %282 = vrot.lane.b32.xlu1 %v280_v7, %s2344_s2 }
 0x1fd   :  { %v320_v8 = vpop.permute.xlu1 %319 }
 0x1fe   :  { %v322_v9 = vadd.f32 %v320_v8, %v2491_v43 }
 0x200   :  { %2137 = vtanh.f32 %v322_v9 }
 0x201   :  { %v283_v10 = vpop.permute.xlu1 %282 }
 0x202   :  { %v285_v12 = vadd.f32 %v283_v10, %v2507_v57 }
 0x204   :  { %2139 = vtanh.f32 %v285_v12 }
 0x205   :  { %2141 = vpow2.f32 %v1835_v18 }
 0x20a   :  { %v2138_v13 = vpop.eup %2137 }
 0x20b   :  { %326 = vrot.lane.b32.xlu0 %v2138_v13, %s2345_s4 }
 0x20e   :  { %v2140_v14 = vpop.eup %2139 }
 0x20f   :  { %289 = vrot.lane.b32.xlu1 %v2140_v14, %s2345_s4  ;;  %v2142_v19 = vpop.eup %2141 }
 0x210   :  { %v311_v20 = vadd.f32 1.0, %v2142_v19 }
 0x212   :  { %2143 = vrcp.f32 %v311_v20 }
 0x21c   :  { %v2144_v22 = vpop.eup %2143 }
 0x21d   :  { %v324_v24 = vsub.f32 1.0, %v2144_v22  ;;  %v330_v26 = vmul.f32 0.0, %v2144_v22 }
 0x27d   :  { %v327_v25 = vpop.permute.xlu0 %326 }
 0x27e   :  { %v329_v27 = vmul.f32 %v327_v25, %v324_v24 }
 0x280   :  { %v2517_v30 = vadd.f32 %v330_v26, %v329_v27 }
 0x281   :  { %v290_v33 = vpop.permute.xlu1 %289 }
 0x282   :  { %v292_v35 = vmul.f32 %v290_v33, %v287_v31  ;;  %v344_v36 = vrot.slane %v2517_v30, 6  ;;  %v489_v25 = vrot.slane %v2517_v30, 2 }
 0x284   :  { %v2520_v37 = vadd.f32 %v293_v34, %v292_v35  ;;  %345 = vrot.lane.b32.xlu1 %v344_v36, %s2346_s24 }
 0x286   :  { %333 = vrot.lane.b32.xlu0 %v2520_v37, %s2345_s4  ;;  %v450_v19 = vrot.slane %v2520_v37, 6 }
 0x2f6   :  { %v346_v38 = vpop.permute.xlu1 %345 }
 0x2f8   :  { %v334_v39 = vpop.permute.xlu0 %333 }
 0x2f9   :  { %337 = vst.msk [vmem:[#allocation2] sm:$0x3] %vm336_vm1, %v334_v39  ;;  %v349_v41 = vsel %vm348_vm2, %v334_v39, %v346_v38 }
 0x2fa   :  { %1836 = vmatmul.mubr.msk.f32.vlgmr.msra.gmra.mrb[0].mxu0 %vm194_vm3, %v349_v41 }
 0x2fb   :  { %2003 = vmatpush1.bf16.msra.mxu0 %v2437_v15  ;;  %738 = vmatprep.mubr.f32.mxu0 %v2343_v0 }
 0x2fc   :  { %2005 = vmatprep.subr.bf16.mxu0 %v2440_v16 }
 0x2ff   :  { %2007 = vmatpush1.bf16.msra.mxu0 %v2447_v21 }
 0x300   :  { %2009 = vmatprep.subr.bf16.mxu0 %v2454_v23 }
 0x303   :  { %2011 = vmatpush1.bf16.msra.mxu0 %v2460_v28 }
 0x304   :  { %2013 = vmatprep.subr.bf16.mxu0 %v2464_v29 }
 0x307   :  { %2015 = vmatpush1.bf16.msra.mxu0 %v2469_v32 }
 0x308   :  { %2033 = vmatprep.subr.bf16.mxu0 %v2432_v11 }
 0x3cd   :  { %v419_v42 = vpop.f32.mrb[0].mxu0 }
 0x3ce   :  { %v420_v44 = vadd.f32 %v419_v42, %v2499_v50  ;;  %v421_v46 = vpop.f32.mrb[1].mxu0 }
 0x3cf   :  { %v422_v47 = vadd.f32 %v421_v46, %v2496_v45 }
 0x3d0   :  { %v425_v48 = vrot.slane %v420_v44, 6  ;;  %v454_v51 = vrot.slane %v420_v44, 4 }
 0x3d1   :  { %v464_v49 = vrot.slane %v422_v47, 4 }
 0x3d2   :  { %434 = vrot.lane.b32.xlu1 %v425_v48, %s2344_s2  ;;  %v427_v52 = vadd.f32 %v425_v48, %v2507_v57  ;;  %v456_v53 = vadd.f32 %v454_v51, %v2504_v55 }
 0x3d3   :  { %473 = vrot.lane.b32.xlu0 %v464_v49, %s2344_s2  ;;  %v466_v12 = vadd.f32 %v464_v49, %v2491_v43 }
 0x3d4   :  { %v1837_v54 = vmul.f32 -1.442695, %v427_v52  ;;  %v1838_v56 = vmul.f32 -1.442695, %v456_v53 }
 0x3d5   :  { %v1839_v13 = vmul.f32 -1.442695, %v466_v12 }
 0x3d6   :  { %2145 = vpow2.f32 %v1837_v54 }
 0x3d7   :  { %2147 = vpow2.f32 %v1838_v56 }
 0x3e0   :  { %v2146_v58 = vpop.eup %2145 }
 0x3e1   :  { %v2148_v59 = vpop.eup %2147  ;;  %v431_v60 = vadd.f32 1.0, %v2146_v58 }
 0x3e2   :  { %v460_v61 = vadd.f32 1.0, %v2148_v59 }
 0x3e3   :  { %2149 = vrcp.f32 %v431_v60 }
 0x3e4   :  { %2151 = vrcp.f32 %v460_v61 }
 0x3ed   :  { %v2150_v62 = vpop.eup %2149 }
 0x3ee   :  { %v2152_v1 = vpop.eup %2151  ;;  %v444_v20 = vsub.f32 1.0, %v2150_v62  ;;  %v452_v26 = vmul.f32 %v2150_v62, %v450_v19 }
 0x444   :  { %v435_v63 = vpop.permute.xlu1 %434 }
 0x445   :  { %v437_v2 = vmul.f32 %v2150_v62, %v435_v63  ;;  %v474_v3 = vpop.permute.xlu0 %473 }
 0x446   :  { %v476_v4 = vmul.f32 %v2152_v1, %v474_v3 }
 0x447   :  { %439 = vrot.lane.b32.xlu1 %v437_v2, %s2344_s2 }
 0x448   :  { %478 = vrot.lane.b32.xlu0 %v476_v4, %s2344_s2 }
 0x4b9   :  { %v440_v5 = vpop.permute.xlu1 %439 }
 0x4ba   :  { %v442_v6 = vadd.f32 %v440_v5, %v2507_v57  ;;  %v479_v7 = vpop.permute.xlu0 %478 }
 0x4bb   :  { %v481_v8 = vadd.f32 %v479_v7, %v2491_v43 }
 0x4bc   :  { %2153 = vtanh.f32 %v442_v6 }
 0x4bd   :  { %2155 = vtanh.f32 %v481_v8 }
 0x4be   :  { %2157 = vpow2.f32 %v1839_v13 }
 0x4c6   :  { %v2154_v9 = vpop.eup %2153 }
 0x4c7   :  { %v2156_v10 = vpop.eup %2155  ;;  %446 = vrot.lane.b32.xlu1 %v2154_v9, %s2345_s4 }
 0x4c8   :  { %485 = vrot.lane.b32.xlu0 %v2156_v10, %s2345_s4  ;;  %v2158_v14 = vpop.eup %2157 }
 0x4c9   :  { %v470_v17 = vadd.f32 1.0, %v2158_v14 }
 0x4cb   :  { %2159 = vrcp.f32 %v470_v17 }
 0x4d5   :  { %v2160_v18 = vpop.eup %2159 }
 0x4d6   :  { %v483_v24 = vsub.f32 1.0, %v2160_v18  ;;  %v491_v33 = vmul.f32 %v2160_v18, %v489_v25 }
 0x539   :  { %v447_v22 = vpop.permute.xlu1 %446 }
 0x53a   :  { %v449_v27 = vmul.f32 %v447_v22, %v444_v20  ;;  %v486_v31 = vpop.permute.xlu0 %485 }
 0x53b   :  { %v488_v34 = vmul.f32 %v486_v31, %v483_v24 }
 0x53c   :  { %v2552_v35 = vadd.f32 %v452_v26, %v449_v27 }
 0x53d   :  { %v2554_v36 = vadd.f32 %v491_v33, %v488_v34 }
 0x53e   :  { %494 = vrot.lane.b32.xlu0 %v2552_v35, %s2345_s4  ;;  %v611_v20 = vrot.slane %v2552_v35, 6 }
 0x53f   :  { %v505_v38 = vrot.slane %v2554_v36, 2 }
 0x541   :  { %506 = vrot.lane.b32.xlu1 %v505_v38, %s2346_s24 }
 0x5b0   :  { %v495_v37 = vpop.permute.xlu0 %494 }
 0x5b1   :  { %498 = vst.msk [vmem:[#allocation2] sm:$0xc] %vm497_vm4, %v495_v37 }
 0x5b3   :  { %v507_v39 = vpop.permute.xlu1 %506 }
 0x5b4   :  { %v509_v41 = vsel %vm348_vm2, %v495_v37, %v507_v39 }
 0x5b5   :  { %v511_v42 = vrot.slane %v509_v41, 2 }
 0x5b7   :  { %1840 = vmatmul.mubr.msk.f32.vlgmr.msra.gmra.mrb[6].mxu1 %vm194_vm3, %v511_v42 }
 0x5b8   :  { %2019 = vmatpush1.bf16.msra.mxu1 %v2437_v15  ;;  %895 = vmatprep.mubr.f32.mxu1 %v2343_v0 }
 0x5b9   :  { %2021 = vmatprep.subr.bf16.mxu1 %v2440_v16 }
 0x5bc   :  { %2023 = vmatpush1.bf16.msra.mxu1 %v2447_v21 }
 0x5bd   :  { %2025 = vmatprep.subr.bf16.mxu1 %v2454_v23 }
 0x5c0   :  { %2027 = vmatpush1.bf16.msra.mxu1 %v2460_v28 }
 0x5c1   :  { %2029 = vmatprep.subr.bf16.mxu1 %v2464_v29 }
 0x5c4   :  { %2031 = vmatpush1.bf16.msra.mxu1 %v2469_v32 }
 0x5c5   :  { %2049 = vmatprep.subr.bf16.mxu1 %v2432_v11 }
 0x68a   :  { %v580_v44 = vpop.f32.mrb[6].mxu1 }
 0x68b   :  { %v581_v46 = vadd.f32 %v580_v44, %v2499_v50  ;;  %v582_v47 = vpop.f32.mrb[7].mxu1 }
 0x68c   :  { %v583_v48 = vadd.f32 %v582_v47, %v2496_v45 }
 0x68d   :  { %v586_v49 = vrot.slane %v581_v46, 4  ;;  %v615_v52 = vrot.slane %v581_v46, 6 }
 0x68e   :  { %v625_v51 = vrot.slane %v583_v48, 6 }
 0x68f   :  { %595 = vrot.lane.b32.xlu1 %v586_v49, %s2344_s2  ;;  %v588_v53 = vadd.f32 %v586_v49, %v2507_v57  ;;  %v617_v54 = vadd.f32 %v615_v52, %v2504_v55 }
 0x690   :  { %634 = vrot.lane.b32.xlu0 %v625_v51, %s2344_s2  ;;  %v627_v13 = vadd.f32 %v625_v51, %v2491_v43 }
 0x691   :  { %v1841_v56 = vmul.f32 -1.442695, %v588_v53  ;;  %v1842_v58 = vmul.f32 -1.442695, %v617_v54 }
 0x692   :  { %v1843_v14 = vmul.f32 -1.442695, %v627_v13 }
 0x693   :  { %2161 = vpow2.f32 %v1841_v56 }
 0x694   :  { %2163 = vpow2.f32 %v1842_v58 }
 0x69d   :  { %v2162_v59 = vpop.eup %2161 }
 0x69e   :  { %v2164_v60 = vpop.eup %2163  ;;  %v592_v61 = vadd.f32 1.0, %v2162_v59 }
 0x69f   :  { %v621_v62 = vadd.f32 1.0, %v2164_v60 }
 0x6a0   :  { %2165 = vrcp.f32 %v592_v61 }
 0x6a1   :  { %2167 = vrcp.f32 %v621_v62 }
 0x6aa   :  { %v2166_v63 = vpop.eup %2165 }
 0x6ab   :  { %v2168_v2 = vpop.eup %2167  ;;  %v605_v22 = vsub.f32 1.0, %v2166_v63  ;;  %v613_v26 = vmul.f32 %v2166_v63, %v611_v20 }
 0x701   :  { %v596_v1 = vpop.permute.xlu1 %595 }
 0x702   :  { %v598_v3 = vmul.f32 %v2166_v63, %v596_v1  ;;  %v635_v4 = vpop.permute.xlu0 %634 }
 0x703   :  { %v637_v5 = vmul.f32 %v2168_v2, %v635_v4 }
 0x704   :  { %600 = vrot.lane.b32.xlu1 %v598_v3, %s2344_s2 }
 0x705   :  { %639 = vrot.lane.b32.xlu0 %v637_v5, %s2344_s2 }
 0x776   :  { %v601_v6 = vpop.permute.xlu1 %600 }
 0x777   :  { %v603_v7 = vadd.f32 %v601_v6, %v2507_v57  ;;  %v640_v8 = vpop.permute.xlu0 %639 }
 0x778   :  { %v642_v9 = vadd.f32 %v640_v8, %v2491_v43 }
 0x779   :  { %2169 = vtanh.f32 %v603_v7 }
 0x77a   :  { %2171 = vtanh.f32 %v642_v9 }
 0x77b   :  { %2173 = vpow2.f32 %v1843_v14 }
 0x783   :  { %v2170_v10 = vpop.eup %2169 }
 0x784   :  { %v2172_v12 = vpop.eup %2171  ;;  %607 = vrot.lane.b32.xlu1 %v2170_v10, %s2345_s4 }
 0x785   :  { %646 = vrot.lane.b32.xlu0 %v2172_v12, %s2345_s4  ;;  %v2174_v17 = vpop.eup %2173 }
 0x786   :  { %v631_v18 = vadd.f32 1.0, %v2174_v17 }
 0x788   :  { %2175 = vrcp.f32 %v631_v18 }
 0x792   :  { %v2176_v19 = vpop.eup %2175 }
 0x793   :  { %v644_v25 = vsub.f32 1.0, %v2176_v19  ;;  %v651_v33 = vmul.f32 %v2176_v19, %v505_v38 }
 0x7f6   :  { %v608_v24 = vpop.permute.xlu1 %607 }
 0x7f7   :  { %v610_v27 = vmul.f32 %v608_v24, %v605_v22  ;;  %v647_v31 = vpop.permute.xlu0 %646 }
 0x7f8   :  { %v649_v34 = vmul.f32 %v647_v31, %v644_v25 }
 0x7f9   :  { %v2590_v37 = vadd.f32 %v613_v26, %v610_v27 }
 0x7fa   :  { %v2592_v39 = vadd.f32 %v651_v33, %v649_v34 }
 0x7fb   :  { %654 = vrot.lane.b32.xlu0 %v2590_v37, %s2345_s4  ;;  %v771_v20 = vrot.slane %v2590_v37, 6 }
 0x7fc   :  { %v665_v41 = vrot.slane %v2592_v39, 6  ;;  %v806_v19 = vrot.slane %v2592_v39, 2 }
 0x7fe   :  { %666 = vrot.lane.b32.xlu1 %v665_v41, %s2346_s24 }
 0x86d   :  { %v655_v35 = vpop.permute.xlu0 %654 }
 0x86e   :  { %658 = vst.msk [vmem:[#allocation2] sm:$0x30] %vm657_vm5, %v655_v35 }
 0x870   :  { %v667_v42 = vpop.permute.xlu1 %666 }
 0x871   :  { %v669_v44 = vsel %vm348_vm2, %v655_v35, %v667_v42 }
 0x872   :  { %v671_v38 = vrot.slane %v669_v44, 4 }
 0x874   :  { %1844 = vmatmul.mubr.msk.f32.vlgmr.msra.gmra.mrb[2].mxu0 %vm194_vm3, %v671_v38 }
 0x875   :  { %2035 = vmatpush1.bf16.msra.mxu0 %v2437_v15  ;;  %1050 = vmatprep.mubr.f32.mxu0 %v2343_v0 }
 0x876   :  { %2037 = vmatprep.subr.bf16.mxu0 %v2440_v16 }
 0x879   :  { %2039 = vmatpush1.bf16.msra.mxu0 %v2447_v21 }
 0x87a   :  { %2041 = vmatprep.subr.bf16.mxu0 %v2454_v23 }
 0x87d   :  { %2043 = vmatpush1.bf16.msra.mxu0 %v2460_v28 }
 0x87e   :  { %2045 = vmatprep.subr.bf16.mxu0 %v2464_v29 }
 0x881   :  { %2047 = vmatpush1.bf16.msra.mxu0 %v2469_v32 }
 0x882   :  { %2065 = vmatprep.subr.bf16.mxu0 %v2432_v11 }
 0x947   :  { %v740_v46 = vpop.f32.mrb[2].mxu0 }
 0x948   :  { %v741_v47 = vadd.f32 %v740_v46, %v2499_v50  ;;  %v742_v48 = vpop.f32.mrb[3].mxu0 }
 0x949   :  { %v743_v49 = vadd.f32 %v742_v48, %v2496_v45 }
 0x94a   :  { %v746_v51 = vrot.slane %v741_v47, 2  ;;  %v775_v52 = vadd.f32 %v741_v47, %v2504_v55 }
 0x94b   :  { %790 = vrot.lane.b32.xlu0 %v743_v49, %s2344_s2  ;;  %v782_v10 = vadd.f32 %v743_v49, %v2491_v43 }
 0x94c   :  { %755 = vrot.lane.b32.xlu1 %v746_v51, %s2344_s2  ;;  %v748_v53 = vadd.f32 %v746_v51, %v2507_v57  ;;  %v1846_v54 = vmul.f32 -1.442695, %v775_v52 }
 0x94d   :  { %v1847_v12 = vmul.f32 -1.442695, %v782_v10 }
 0x94e   :  { %v1845_v56 = vmul.f32 -1.442695, %v748_v53  ;;  %2177 = vpow2.f32 %v1846_v54 }
 0x950   :  { %2179 = vpow2.f32 %v1845_v56 }
 0x958   :  { %v2178_v11 = vpop.eup %2177 }
 0x959   :  { %v779_v59 = vadd.f32 1.0, %v2178_v11 }
 0x95a   :  { %v2180_v58 = vpop.eup %2179 }
 0x95b   :  { %v752_v60 = vadd.f32 1.0, %v2180_v58  ;;  %2181 = vrcp.f32 %v779_v59 }
 0x95d   :  { %2183 = vrcp.f32 %v752_v60 }
 0x965   :  { %v2182_v61 = vpop.eup %2181 }
 0x967   :  { %v2184_v63 = vpop.eup %2183 }
 0x968   :  { %v765_v24 = vsub.f32 1.0, %v2184_v63  ;;  %v773_v31 = vmul.f32 %v2184_v63, %v771_v20 }
 0x9bd   :  { %v791_v62 = vpop.permute.xlu0 %790 }
 0x9be   :  { %v793_v1 = vmul.f32 %v2182_v61, %v791_v62  ;;  %v756_v2 = vpop.permute.xlu1 %755 }
 0x9bf   :  { %v758_v3 = vmul.f32 %v2184_v63, %v756_v2 }
 0x9c0   :  { %795 = vrot.lane.b32.xlu0 %v793_v1, %s2344_s2 }
 0x9c1   :  { %760 = vrot.lane.b32.xlu1 %v758_v3, %s2344_s2 }
 0xa32   :  { %v796_v4 = vpop.permute.xlu0 %795 }
 0xa33   :  { %v798_v5 = vadd.f32 %v796_v4, %v2491_v43  ;;  %v761_v6 = vpop.permute.xlu1 %760 }
 0xa34   :  { %v763_v7 = vadd.f32 %v761_v6, %v2507_v57 }
 0xa35   :  { %2185 = vtanh.f32 %v798_v5 }
 0xa36   :  { %2187 = vtanh.f32 %v763_v7 }
 0xa37   :  { %2189 = vpow2.f32 %v1847_v12 }
 0xa3f   :  { %v2186_v8 = vpop.eup %2185 }
 0xa40   :  { %v2188_v9 = vpop.eup %2187  ;;  %802 = vrot.lane.b32.xlu0 %v2186_v8, %s2345_s4 }
 0xa41   :  { %767 = vrot.lane.b32.xlu1 %v2188_v9, %s2345_s4  ;;  %v2190_v13 = vpop.eup %2189 }
 0xa42   :  { %v786_v14 = vadd.f32 1.0, %v2190_v13 }
 0xa44   :  { %2191 = vrcp.f32 %v786_v14 }
 0xa4e   :  { %v2192_v17 = vpop.eup %2191 }
 0xa4f   :  { %v800_v18 = vsub.f32 1.0, %v2192_v17  ;;  %v808_v25 = vmul.f32 %v2192_v17, %v806_v19 }
 0xab2   :  { %v803_v22 = vpop.permute.xlu0 %802 }
 0xab3   :  { %v805_v26 = vmul.f32 %v803_v22, %v800_v18  ;;  %v768_v27 = vpop.permute.xlu1 %767 }
 0xab4   :  { %v770_v33 = vmul.f32 %v768_v27, %v765_v24 }
 0xab5   :  { %v2625_v34 = vadd.f32 %v808_v25, %v805_v26 }
 0xab6   :  { %v2627_v43 = vadd.f32 %v773_v31, %v770_v33 }
 0xab7   :  { %v822_v41 = vrot.slane %v2625_v34, 2 }
 0xab8   :  { %811 = vrot.lane.b32.xlu0 %v2627_v43, %s2345_s4  ;;  %v926_v18 = vrot.slane %v2627_v43, 6 }
 0xab9   :  { %823 = vrot.lane.b32.xlu1 %v822_v41, %s2346_s24 }
 0xb2a   :  { %v812_v37 = vpop.permute.xlu0 %811 }
 0xb2b   :  { %815 = vst.msk [vmem:[#allocation2] sm:$0xc0] %vm814_vm6, %v812_v37  ;;  %v824_v35 = vpop.permute.xlu1 %823 }
 0xb2c   :  { %v826_v42 = vsel %vm348_vm2, %v812_v37, %v824_v35 }
 0xb2d   :  { %v828_v44 = vrot.slane %v826_v42, 6 }
 0xb2f   :  { %1848 = vmatmul.mubr.msk.f32.vlgmr.msra.gmra.mrb[8].mxu1 %vm194_vm3, %v828_v44 }
 0xb30   :  { %2051 = vmatpush1.bf16.msra.mxu1 %v2437_v15  ;;  %1209 = vmatprep.mubr.f32.mxu1 %v2343_v0 }
 0xb31   :  { %2053 = vmatprep.subr.bf16.mxu1 %v2440_v16 }
 0xb34   :  { %2055 = vmatpush1.bf16.msra.mxu1 %v2447_v21 }
 0xb35   :  { %2057 = vmatprep.subr.bf16.mxu1 %v2454_v23 }
 0xb38   :  { %2059 = vmatpush1.bf16.msra.mxu1 %v2460_v28 }
 0xb39   :  { %2061 = vmatprep.subr.bf16.mxu1 %v2464_v29 }
 0xb3c   :  { %2063 = vmatpush1.bf16.msra.mxu1 %v2469_v32 }
 0xc02   :  { %v897_v38 = vpop.f32.mrb[8].mxu1 }
 0xc03   :  { %v898_v46 = vadd.f32 %v897_v38, %v2499_v50  ;;  %v899_v47 = vpop.f32.mrb[9].mxu1 }
 0xc04   :  { %v900_v48 = vadd.f32 %v899_v47, %v2496_v45 }
 0xc05   :  { %910 = vrot.lane.b32.xlu1 %v898_v46, %s2344_s2  ;;  %v930_v51 = vrot.slane %v898_v46, 2  ;;  %v902_v52 = vadd.f32 %v898_v46, %v2504_v55 }
 0xc06   :  { %v940_v49 = vrot.slane %v900_v48, 2 }
 0xc07   :  { %v932_v53 = vadd.f32 %v930_v51, %v2507_v57  ;;  %v1849_v54 = vmul.f32 -1.442695, %v902_v52 }
 0xc08   :  { %949 = vrot.lane.b32.xlu0 %v940_v49, %s2344_s2  ;;  %v942_v10 = vadd.f32 %v940_v49, %v2489_v40 }
 0xc09   :  { %v1850_v56 = vmul.f32 -1.442695, %v932_v53  ;;  %2193 = vpow2.f32 %v1849_v54 }
 0xc0a   :  { %v1851_v12 = vmul.f32 -1.442695, %v942_v10 }
 0xc0b   :  { %2195 = vpow2.f32 %v1850_v56 }
 0xc13   :  { %v2194_v11 = vpop.eup %2193 }
 0xc14   :  { %v906_v59 = vadd.f32 1.0, %v2194_v11 }
 0xc15   :  { %v2196_v58 = vpop.eup %2195 }
 0xc16   :  { %v936_v60 = vadd.f32 1.0, %v2196_v58  ;;  %2197 = vrcp.f32 %v906_v59 }
 0xc18   :  { %2199 = vrcp.f32 %v936_v60 }
 0xc20   :  { %v2198_v61 = vpop.eup %2197 }
 0xc21   :  { %v920_v19 = vsub.f32 1.0, %v2198_v61  ;;  %v928_v22 = vmul.f32 %v2198_v61, %v926_v18 }
 0xc22   :  { %v2200_v1 = vpop.eup %2199 }
 0xc77   :  { %v911_v62 = vpop.permute.xlu1 %910 }
 0xc78   :  { %v913_v63 = vmul.f32 %v2198_v61, %v911_v62 }
 0xc7a   :  { %v950_v2 = vpop.permute.xlu0 %949  ;;  %915 = vrot.lane.b32.xlu1 %v913_v63, %s2344_s2 }
 0xc7b   :  { %v952_v3 = vmul.f32 %v2200_v1, %v950_v2 }
 0xc7d   :  { %954 = vrot.lane.b32.xlu0 %v952_v3, %s2344_s2 }
 0xcec   :  { %v916_v4 = vpop.permute.xlu1 %915 }
 0xced   :  { %v918_v5 = vadd.f32 %v916_v4, %v2504_v55 }
 0xcef   :  { %2201 = vtanh.f32 %v918_v5  ;;  %v955_v6 = vpop.permute.xlu0 %954 }
 0xcf0   :  { %v957_v7 = vadd.f32 %v955_v6, %v2489_v40 }
 0xcf2   :  { %2203 = vtanh.f32 %v957_v7 }
 0xcf3   :  { %2205 = vpow2.f32 %v1851_v12 }
 0xcf9   :  { %v2202_v8 = vpop.eup %2201 }
 0xcfa   :  { %922 = vrot.lane.b32.xlu1 %v2202_v8, %s2345_s4 }
 0xcfc   :  { %v2204_v9 = vpop.eup %2203 }
 0xcfd   :  { %961 = vrot.lane.b32.xlu0 %v2204_v9, %s2345_s4  ;;  %v2206_v13 = vpop.eup %2205 }
 0xcfe   :  { %v946_v14 = vadd.f32 1.0, %v2206_v13 }
 0xd00   :  { %2207 = vrcp.f32 %v946_v14 }
 0xd0a   :  { %v2208_v17 = vpop.eup %2207 }
 0xd0b   :  { %v959_v25 = vsub.f32 1.0, %v2208_v17  ;;  %v966_v31 = vmul.f32 %v2208_v17, %v822_v41 }
 0xd6c   :  { %v923_v20 = vpop.permute.xlu1 %922 }
 0xd6d   :  { %v925_v24 = vmul.f32 %v923_v20, %v920_v19 }
 0xd6f   :  { %v2660_v26 = vadd.f32 %v928_v22, %v925_v24  ;;  %v962_v27 = vpop.permute.xlu0 %961 }
 0xd70   :  { %v964_v33 = vmul.f32 %v962_v27, %v959_v25 }
 0xd71   :  { %969 = vrot.lane.b32.xlu0 %v2660_v26, %s2345_s4  ;;  %v1083_v8 = vrot.slane %v2660_v26, 6 }
 0xd72   :  { %v2666_v37 = vadd.f32 %v966_v31, %v964_v33 }
 0xd74   :  { %v978_v35 = vrot.slane %v2666_v37, 6  ;;  %v1122_v13 = vrot.slane %v2666_v37, 2 }
 0xd76   :  { %979 = vrot.lane.b32.xlu1 %v978_v35, %s2346_s24 }
 0xde3   :  { %v2670_v43 = vpop.permute.xlu0 %969 }
 0xde8   :  { %v980_v42 = vpop.permute.xlu1 %979 }
 0xde9   :  { %v982_v44 = vsel %vm348_vm2, %v2670_v43, %v980_v42 }
 0xdea   :  { %1852 = vmatmul.mubr.msk.f32.vlgmr.msra.gmra.mrb[4].mxu0 %vm194_vm3, %v982_v44 }
 0xdeb   :  { %2067 = vmatpush1.bf16.msra.mxu0 %v2437_v15  ;;  %1367 = vmatprep.mubr.f32.mxu0 %v2343_v0 }
 0xdec   :  { %2069 = vmatprep.subr.bf16.mxu0 %v2440_v16 }
 0xdef   :  { %2071 = vmatpush1.bf16.msra.mxu0 %v2447_v21 }
 0xdf0   :  { %2073 = vmatprep.subr.bf16.mxu0 %v2454_v23 }
 0xdf3   :  { %2075 = vmatpush1.bf16.msra.mxu0 %v2460_v28 }
 0xdf4   :  { %2077 = vmatprep.subr.bf16.mxu0 %v2464_v29 }
 0xdf7   :  { %2079 = vmatpush1.bf16.msra.mxu0 %v2469_v32 }
 0xebd   :  { %v1052_v41 = vpop.f32.mrb[4].mxu0 }
 0xebe   :  { %v1053_v38 = vadd.f32 %v1052_v41, %v2499_v50  ;;  %v1054_v46 = vpop.f32.mrb[5].mxu0 }
 0xebf   :  { %v1055_v15 = vadd.f32 %v1054_v46, %v2496_v45 }
 0xec0   :  { %v1058_v47 = vrot.slane %v1053_v38, 6  ;;  %v1087_v16 = vrot.slane %v1053_v38, 4 }
 0xec1   :  { %v1097_v48 = vrot.slane %v1055_v15, 4 }
 0xec2   :  { %1067 = vrot.lane.b32.xlu1 %v1058_v47, %s2344_s2  ;;  %v1060_v21 = vadd.f32 %v1058_v47, %v2504_v55  ;;  %v1089_v23 = vadd.f32 %v1087_v16, %v2507_v57 }
 0xec3   :  { %1106 = vrot.lane.b32.xlu0 %v1097_v48, %s2344_s2  ;;  %v1099_v3 = vadd.f32 %v1097_v48, %v2489_v40 }
 0xec4   :  { %v1853_v28 = vmul.f32 -1.442695, %v1060_v21  ;;  %v1854_v29 = vmul.f32 -1.442695, %v1089_v23 }
 0xec5   :  { %v1855_v4 = vmul.f32 -1.442695, %v1099_v3 }
 0xec6   :  { %2209 = vpow2.f32 %v1853_v28 }
 0xec7   :  { %2211 = vpow2.f32 %v1854_v29 }
 0xed0   :  { %v2210_v32 = vpop.eup %2209 }
 0xed1   :  { %v2212_v49 = vpop.eup %2211  ;;  %v1064_v51 = vadd.f32 1.0, %v2210_v32 }
 0xed2   :  { %v1093_v52 = vadd.f32 1.0, %v2212_v49 }
 0xed3   :  { %2213 = vrcp.f32 %v1064_v51 }
 0xed4   :  { %2215 = vrcp.f32 %v1093_v52 }
 0xedd   :  { %v2214_v53 = vpop.eup %2213 }
 0xede   :  { %v2216_v56 = vpop.eup %2215  ;;  %v1077_v9 = vsub.f32 1.0, %v2214_v53  ;;  %v1085_v14 = vmul.f32 %v2214_v53, %v1083_v8 }
 0xf34   :  { %v1068_v54 = vpop.permute.xlu1 %1067 }
 0xf35   :  { %v1070_v11 = vmul.f32 %v2214_v53, %v1068_v54  ;;  %v1107_v58 = vpop.permute.xlu0 %1106 }
 0xf36   :  { %v1109_v59 = vmul.f32 %v2216_v56, %v1107_v58 }
 0xf37   :  { %1072 = vrot.lane.b32.xlu1 %v1070_v11, %s2344_s2 }
 0xf38   :  { %1111 = vrot.lane.b32.xlu0 %v1109_v59, %s2344_s2 }
 0xfa9   :  { %v1073_v60 = vpop.permute.xlu1 %1072 }
 0xfaa   :  { %v1075_v61 = vadd.f32 %v1073_v60, %v2504_v55  ;;  %v1112_v62 = vpop.permute.xlu0 %1111 }
 0xfab   :  { %v1114_v63 = vadd.f32 %v1112_v62, %v2489_v40 }
 0xfac   :  { %2217 = vtanh.f32 %v1075_v61 }
 0xfad   :  { %2219 = vtanh.f32 %v1114_v63 }
 0xfae   :  { %2221 = vpow2.f32 %v1855_v4 }
 0xfb6   :  { %v2218_v1 = vpop.eup %2217 }
 0xfb7   :  { %v2220_v2 = vpop.eup %2219  ;;  %1079 = vrot.lane.b32.xlu1 %v2218_v1, %s2345_s4 }
 0xfb8   :  { %1118 = vrot.lane.b32.xlu0 %v2220_v2, %s2345_s4  ;;  %v2222_v5 = vpop.eup %2221 }
 0xfb9   :  { %v1103_v6 = vadd.f32 1.0, %v2222_v5 }
 0xfbb   :  { %2223 = vrcp.f32 %v1103_v6 }
 0xfc5   :  { %v2224_v7 = vpop.eup %2223 }
 0xfc6   :  { %v1116_v12 = vsub.f32 1.0, %v2224_v7  ;;  %v1124_v19 = vmul.f32 %v2224_v7, %v1122_v13 }
0x1029   :  { %v1080_v10 = vpop.permute.xlu1 %1079 }
0x102a   :  { %v1082_v17 = vmul.f32 %v1080_v10, %v1077_v9  ;;  %v1119_v18 = vpop.permute.xlu0 %1118 }
0x102b   :  { %v1121_v20 = vmul.f32 %v1119_v18, %v1116_v12 }
0x102c   :  { %v1086_v22 = vadd.f32 %v1085_v14, %v1082_v17 }
0x102d   :  { %v2698_v24 = vadd.f32 %v1124_v19, %v1121_v20 }
0x102e   :  { %1127 = vrot.lane.b32.xlu0 %v1086_v22, %s2345_s4  ;;  %v1242_v5 = vrot.slane %v1086_v22, 6 }
0x102f   :  { %v1136_v25 = vrot.slane %v2698_v24, 2 }
0x1031   :  { %1137 = vrot.lane.b32.xlu1 %v1136_v25, %s2346_s24 }
0x10a0   :  { %v2703_v26 = vpop.permute.xlu0 %1127 }
0x10a3   :  { %v1138_v27 = vpop.permute.xlu1 %1137 }
0x10a4   :  { %v1140_v31 = vsel %vm348_vm2, %v2703_v26, %v1138_v27 }
0x10a5   :  { %v1142_v33 = vrot.slane %v1140_v31, 2 }
0x10a7   :  { %1856 = vmatmul.mubr.msk.f32.vlgmr.msra.gmra.mrb[10].mxu1 %vm194_vm3, %v1142_v33 }
0x117a   :  { %v1211_v35 = vpop.f32.mrb[10].mxu1 }
0x117b   :  { %v1212_v42 = vadd.f32 %v1211_v35, %v2499_v50  ;;  %v1213_v44 = vpop.f32.mrb[11].mxu1 }
0x117c   :  { %v1214_v41 = vadd.f32 %v1213_v44, %v2496_v45 }
0x117d   :  { %v1217_v38 = vrot.slane %v1212_v42, 4  ;;  %v1246_v15 = vrot.slane %v1212_v42, 6 }
0x117e   :  { %v1256_v46 = vrot.slane %v1214_v41, 6 }
0x117f   :  { %1226 = vrot.lane.b32.xlu1 %v1217_v38, %s2344_s2  ;;  %v1219_v47 = vadd.f32 %v1217_v38, %v2504_v55  ;;  %v1248_v48 = vadd.f32 %v1246_v15, %v2507_v57 }
0x1180   :  { %1265 = vrot.lane.b32.xlu0 %v1256_v46, %s2344_s2  ;;  %v1258_v63 = vadd.f32 %v1256_v46, %v2489_v40 }
0x1181   :  { %v1857_v16 = vmul.f32 -1.442695, %v1219_v47  ;;  %v1858_v21 = vmul.f32 -1.442695, %v1248_v48 }
0x1182   :  { %v1859_v1 = vmul.f32 -1.442695, %v1258_v63 }
0x1183   :  { %2225 = vpow2.f32 %v1857_v16 }
0x1184   :  { %2227 = vpow2.f32 %v1858_v21 }
0x118d   :  { %v2226_v23 = vpop.eup %2225 }
0x118e   :  { %v2228_v28 = vpop.eup %2227  ;;  %v1223_v29 = vadd.f32 1.0, %v2226_v23 }
0x118f   :  { %v1252_v32 = vadd.f32 1.0, %v2228_v28 }
0x1190   :  { %2229 = vrcp.f32 %v1223_v29 }
0x1191   :  { %2231 = vrcp.f32 %v1252_v32 }
0x119a   :  { %v2230_v49 = vpop.eup %2229 }
0x119b   :  { %v2232_v52 = vpop.eup %2231  ;;  %v1236_v6 = vsub.f32 1.0, %v2230_v49  ;;  %v1244_v9 = vmul.f32 %v2230_v49, %v1242_v5 }
0x11f1   :  { %v1227_v51 = vpop.permute.xlu1 %1226 }
0x11f2   :  { %v1229_v53 = vmul.f32 %v2230_v49, %v1227_v51  ;;  %v1266_v54 = vpop.permute.xlu0 %1265 }
0x11f3   :  { %v1268_v56 = vmul.f32 %v2232_v52, %v1266_v54 }
0x11f4   :  { %1231 = vrot.lane.b32.xlu1 %v1229_v53, %s2344_s2 }
0x11f5   :  { %1270 = vrot.lane.b32.xlu0 %v1268_v56, %s2344_s2  ;;  %v1451_v56 = vld [vmem:[%s2864_s6] sm:$0xff] }
0x1266   :  { %v1232_v11 = vpop.permute.xlu1 %1231 }
0x1267   :  { %v1234_v58 = vadd.f32 %v1232_v11, %v2504_v55  ;;  %v1271_v59 = vpop.permute.xlu0 %1270  ;;  %v1452_v11 = vld [vmem:[%s2864_s6 + $0x8] sm:$0xff] }
0x1268   :  { %v1273_v60 = vadd.f32 %v1271_v59, %v2489_v40  ;;  %v1454_v59 = vld [vmem:[%s2864_s6 + $0x18] sm:$0xff] }
0x1269   :  { %2233 = vtanh.f32 %v1234_v58  ;;  %v2080_v58 = vpack.c.bf16 %v1452_v11, %v1451_v56 }
0x126a   :  { %2235 = vtanh.f32 %v1273_v60 }
0x126b   :  { %2237 = vpow2.f32 %v1859_v1  ;;  %2081 = vmatprep.subr.bf16.mxu1 %v2080_v58 }
0x126c   :  { %2083 = vmatpush3.bf16.msra.mxu1 %v2080_v58 }
0x1273   :  { %v2234_v61 = vpop.eup %2233 }
0x1274   :  { %v2236_v62 = vpop.eup %2235  ;;  %1238 = vrot.lane.b32.xlu1 %v2234_v61, %s2345_s4 }
0x1275   :  { %1277 = vrot.lane.b32.xlu0 %v2236_v62, %s2345_s4  ;;  %v2238_v2 = vpop.eup %2237 }
0x1276   :  { %v1262_v3 = vadd.f32 1.0, %v2238_v2 }
0x1278   :  { %2239 = vrcp.f32 %v1262_v3 }
0x1282   :  { %v2240_v4 = vpop.eup %2239 }
0x1283   :  { %v1275_v8 = vsub.f32 1.0, %v2240_v4  ;;  %v1282_v13 = vmul.f32 %v2240_v4, %v1136_v25 }
0x12e6   :  { %v1239_v7 = vpop.permute.xlu1 %1238 }
0x12e7   :  { %v1241_v10 = vmul.f32 %v1239_v7, %v1236_v6  ;;  %v1278_v12 = vpop.permute.xlu0 %1277 }
0x12e8   :  { %v1280_v14 = vmul.f32 %v1278_v12, %v1275_v8 }
0x12e9   :  { %v2721_v17 = vadd.f32 %v1244_v9, %v1241_v10 }
0x12ea   :  { %v2723_v18 = vadd.f32 %v1282_v13, %v1280_v14 }
0x12eb   :  { %1285 = vrot.lane.b32.xlu0 %v2721_v17, %s2345_s4  ;;  %v1400_v4 = vrot.slane %v2721_v17, 6 }
0x12ec   :  { %v1294_v19 = vrot.slane %v2723_v18, 6  ;;  %v1435_v3 = vrot.slane %v2723_v18, 2 }
0x12ee   :  { %1295 = vrot.lane.b32.xlu1 %v1294_v19, %s2346_s24 }
0x135d   :  { %v2729_v20 = vpop.permute.xlu0 %1285 }
0x1360   :  { %v1296_v22 = vpop.permute.xlu1 %1295 }
0x1361   :  { %v1298_v27 = vsel %vm348_vm2, %v2729_v20, %v1296_v22 }
0x1362   :  { %v1300_v31 = vrot.slane %v1298_v27, 4 }
0x1364   :  { %1860 = vmatmul.mubr.msk.f32.vlgmr.msra.gmra.mrb[6].mxu0 %vm194_vm3, %v1300_v31 }
0x1365   :  { %1919 = vmatprep.mubr.msk.f32.mxu0 %vm2348_vm11, %v2343_v0 }
0x1437   :  { %v1369_v25 = vpop.f32.mrb[6].mxu0 }
0x1438   :  { %v1370_v33 = vadd.f32 %v1369_v25, %v2499_v50  ;;  %v1371_v35 = vpop.f32.mrb[7].mxu0 }
0x1439   :  { %v1372_v42 = vadd.f32 %v1371_v35, %v2496_v45 }
0x143a   :  { %v1375_v44 = vrot.slane %v1370_v33, 2  ;;  %v1404_v41 = vadd.f32 %v1370_v33, %v2507_v57 }
0x143b   :  { %1419 = vrot.lane.b32.xlu0 %v1372_v42, %s2344_s2 }
0x143c   :  { %1384 = vrot.lane.b32.xlu1 %v1375_v44, %s2344_s2  ;;  %v1377_v38 = vadd.f32 %v1375_v44, %v2504_v55  ;;  %v1862_v46 = vmul.f32 -1.442695, %v1404_v41  ;;  %v1866_v44 = vld [vmem:[%s2865_s7] ss:$0 sm:$0xff] }
0x143e   :  { %v1861_v15 = vmul.f32 -1.442695, %v1377_v38  ;;  %2241 = vpow2.f32 %v1862_v46 }
0x1440   :  { %2243 = vpow2.f32 %v1861_v15 }
0x1448   :  { %v2242_v47 = vpop.eup %2241 }
0x1449   :  { %v1408_v16 = vadd.f32 1.0, %v2242_v47 }
0x144a   :  { %v2244_v48 = vpop.eup %2243 }
0x144b   :  { %v1381_v50 = vadd.f32 1.0, %v2244_v48  ;;  %2245 = vrcp.f32 %v1408_v16  ;;  %v2347_v16 = vmov 0.0|0.0  }
0x144c   :  { %2096 = vmatprep.subr.bf16.mxu0 %v2347_v16 }
0x144d   :  { %2247 = vrcp.f32 %v1381_v50 }
0x1455   :  { %v2246_v45 = vpop.eup %2245 }
0x1457   :  { %v2248_v23 = vpop.eup %2247 }
0x1458   :  { %v1394_v6 = vsub.f32 1.0, %v2248_v23  ;;  %v1402_v10 = vmul.f32 %v2248_v23, %v1400_v4 }
0x14ad   :  { %v1420_v21 = vpop.permute.xlu0 %1419 }
0x14ae   :  { %v1422_v28 = vmul.f32 %v2246_v45, %v1420_v21  ;;  %v1385_v29 = vpop.permute.xlu1 %1384 }
0x14af   :  { %v1387_v32 = vmul.f32 %v2248_v23, %v1385_v29 }
0x14b0   :  { %1424 = vrot.lane.b32.xlu0 %v1422_v28, %s2344_s2 }
0x14b1   :  { %1389 = vrot.lane.b32.xlu1 %v1387_v32, %s2344_s2 }
0x1522   :  { %v1425_v57 = vpop.permute.xlu0 %1424 }
0x1523   :  { %v1427_v49 = vadd.f32 %v1425_v57, %v2489_v40  ;;  %v1390_v51 = vpop.permute.xlu1 %1389 }
0x1524   :  { %v1392_v52 = vadd.f32 %v1390_v51, %v2504_v55  ;;  %v1453_v55 = vld [vmem:[%s2864_s6 + $0x10] sm:$0xff] }
0x1525   :  { %2249 = vtanh.f32 %v1427_v49  ;;  %v2084_v60 = vpack.c.bf16 %v1454_v59, %v1453_v55 }
0x1526   :  { %2251 = vtanh.f32 %v1392_v52 }
0x1527   :  { %2085 = vmatprep.subr.bf16.mxu1 %v2084_v60 }
0x1528   :  { %2087 = vmatpush3.bf16.msra.mxu1 %v2084_v60 }
0x152f   :  { %v2250_v53 = vpop.eup %2249 }
0x1530   :  { %v2252_v54 = vpop.eup %2251  ;;  %1431 = vrot.lane.b32.xlu0 %v2250_v53, %s2345_s4 }
0x1531   :  { %1396 = vrot.lane.b32.xlu1 %v2252_v54, %s2345_s4 }
0x1534   :  { %339 = vrot.lane.b32.xlu0 %v2517_v30, %s2346_s24  ;;  %v1411_v30 = vadd.f32 %v1372_v42, %v2489_v40  ;;  %v1458_v40 = vld [vmem:[%s2864_s6 + $0x38] sm:$0xff] }
0x1535   :  { %500 = vrot.lane.b32.xlu1 %v2554_v36, %s2346_s24 }
0x1536   :  { %v1863_v36 = vmul.f32 -1.442695, %v1411_v30  ;;  %v1572_v30 = vld [vmem:[%s2863_s5] sm:$0x3] }
0x1538   :  { %660 = vrot.lane.b32.xlu0 %v2592_v39, %s2346_s24  ;;  %2253 = vpow2.f32 %v1863_v36 }
0x1539   :  { %817 = vrot.lane.b32.xlu1 %v2625_v34, %s2346_s24  ;;  %v1455_v34 = vld [vmem:[%s2864_s6 + $0x20] sm:$0xff] }
0x153c   :  { %974 = vrot.lane.b32.xlu0 %v2666_v37, %s2346_s24  ;;  %v1456_v37 = vld [vmem:[%s2864_s6 + $0x28] sm:$0xff] }
0x153d   :  { %1132 = vrot.lane.b32.xlu1 %v2698_v24, %s2346_s24  ;;  %v2088_v62 = vpack.c.bf16 %v1456_v37, %v1455_v34  ;;  %v1457_v24 = vld [vmem:[%s2864_s6 + $0x30] sm:$0xff]  ;;  %v1726_v34 = vld [vmem:[%s2866_s8 + $0x8] sm:$0xff] }
0x153e   :  { %v2092_v63 = vpack.c.bf16 %v1458_v40, %v1457_v24  ;;  %v1727_v37 = vld [vmem:[%s2866_s8 + $0x10] sm:$0xff]  ;;  %v1728_v24 = vld [vmem:[%s2866_s8 + $0x18] sm:$0xff]  ;;  %v1729_v40 = vld [vmem:[%s2866_s8 + $0x20] sm:$0xff] }
0x153f   :  { %2089 = vmatprep.subr.bf16.mxu1 %v2088_v62 }
0x1540   :  { %1290 = vrot.lane.b32.xlu0 %v2723_v18, %s2346_s24  ;;  %2091 = vmatpush3.bf16.msra.mxu1 %v2088_v62 }
0x1541   :  { %2093 = vmatprep.subr.bf16.mxu1 %v2092_v63 }
0x1542   :  { %v2254_v61 = vpop.eup %2253 }
0x1543   :  { %v1415_v39 = vadd.f32 1.0, %v2254_v61  ;;  %v2349_v61 = vmov 0  }
0x1544   :  { %2095 = vmatpush3.bf16.msra.mxu1 %v2092_v63  ;;  %2128 = vset.pattern.permute.xlu0 %v2349_v61  ;;  %v1730_v63 = vld [vmem:[%s2866_s8 + $0x28] sm:$0xff] }
0x1545   :  { %2255 = vrcp.f32 %v1415_v39  ;;  %v1725_v39 = vld [vmem:[%s2866_s8] sm:$0xff] }
0x1546   :  { %v2103_v62 = vpack.c.bf16 %v1726_v34, %v1725_v39 }
0x154f   :  { %v2256_v1 = vpop.eup %2255 }
0x1550   :  { %v1429_v2 = vsub.f32 1.0, %v2256_v1  ;;  %v1437_v7 = vmul.f32 %v2256_v1, %v1435_v3  ;;  %v2109_v1 = vpack.c.bf16 %v1730_v63, %v1729_v40  ;;  %v1732_v3 = vld [vmem:[%s2866_s8 + $0x38] sm:$0xff] }
0x15a2   :  { %v1432_v5 = vpop.permute.xlu0 %1431 }
0x15a3   :  { %v1434_v8 = vmul.f32 %v1432_v5, %v1429_v2  ;;  %v1397_v9 = vpop.permute.xlu1 %1396  ;;  %v1731_v2 = vld [vmem:[%s2866_s8 + $0x30] sm:$0xff]  ;;  %s2350_s8 = smov [#allocation8]  }
0x15a4   :  { %v1399_v12 = vmul.f32 %v1397_v9, %v1394_v6  ;;  %v2112_v4 = vpack.c.bf16 %v1732_v3, %v1731_v2  ;;  %s1821_s17 = sshll.u32 %s2350_s8, 4  ;;  %s1822_s17 = int_to_ptr.vmem [resolvable:$true] %s1821_s17 }
0x15a5   :  { %v1438_v13 = vadd.f32 %v1437_v7, %v1434_v8  ;;  %s2311_s1 = scalar_lea.vmem %s1822_s17, 32  ;;  %p2316_p3 = scmp.lt.s32.totalorder %s1822_s17, %s1822_s17 }
0x15a6   :  { %v1403_v14 = vadd.f32 %v1402_v10, %v1399_v12  ;;  %v340_v19 = vpop.permute.xlu0 %339  ;;  %p2312_p2 = scmp.ne.s32.totalorder %s1822_s17, %s2311_s1  ;;  %p2317_p4 = scmp.lt.s32.totalorder %s2311_s1, %s2311_s1 }
0x15a7   :  { %343 = vst.msk [vmem:[#allocation2 + $0x8] sm:$0xc0] %vm342_vm7, %v340_v19  ;;  %1445 = vrot.lane.b32.xlu1 %v1438_v13, %s2346_s24  ;;  %v501_v18 = vpop.permute.xlu1 %500  ;;  %v1869_v13 = vld [vmem:[%s2867_s9] ss:$0 sm:$0xff] }
0x15a8   :  { %504 = vst.msk [vmem:[#allocation2 + $0x8] sm:$0x30] %vm503_vm8, %v501_v18  ;;  %1440 = vrot.lane.b32.xlu0 %v1403_v14, %s2345_s4  ;;  %p2318_p5 = por %p2317_p4, %p2316_p3 }
0x15a9   :  { %1288 = vst.msk [vmem:[#allocation2 + $0x8] sm:$0x30] %vm657_vm5, %v2729_v20 }
0x15aa   :  { %v661_v17 = vpop.permute.xlu0 %660  ;;  %p2319_p6 = pnand %p2318_p5, %p2312_p2 }
0x15ab   :  { %664 = vst.msk [vmem:[#allocation2 + $0x8] sm:$0xc] %vm663_vm9, %v661_v17  ;;  %v818_v22 = vpop.permute.xlu1 %817 }
0x15ac   :  { %1130 = vst.msk [vmem:[#allocation2 + $0x8] sm:$0xc] %vm497_vm4, %v2703_v26 }
0x15ad   :  { %821 = vst.msk [vmem:[#allocation2 + $0x8] sm:$0x3] %vm820_vm10, %v818_v22 }
0x15ae   :  { %972 = vst.msk [vmem:[#allocation2 + $0x8] sm:$0x3] %vm336_vm1, %v2670_v43  ;;  %v975_v27 = vpop.permute.xlu0 %974 }
0x15af   :  { %977 = vst.msk [vmem:[#allocation2] sm:$0xc0] %vm342_vm7, %v975_v27  ;;  %v1133_v31 = vpop.permute.xlu1 %1132 }
0x15b0   :  { %1135 = vst.msk [vmem:[#allocation2] sm:$0x30] %vm503_vm8, %v1133_v31 }
0x15b2   :  { %v1291_v25 = vpop.permute.xlu0 %1290 }
0x15b3   :  { %1293 = vst.msk [vmem:[#allocation2] sm:$0xc] %vm663_vm9, %v1291_v25 }
0x1619   :  { %v1446_v20 = vpop.permute.xlu1 %1445 }
0x161a   :  { %1448 = vst.msk [vmem:[#allocation2] sm:$0x3] %vm820_vm10, %v1446_v20  ;;  %v1441_v33 = vpop.permute.xlu0 %1440 }
0x161b   :  { %1443 = vst.msk [vmem:[#allocation2 + $0x8] sm:$0xc0] %vm814_vm6, %v1441_v33 }
0x1621   :  { %v1449_v35 = vld [vmem:[#allocation2] sm:$0xff] }
0x1622   :  { %1912 = vmatprep.mubr.msk.f32.mxu1 %vm194_vm3, %v1449_v35  ;;  %v1450_v26 = vld [vmem:[#allocation2 + $0x8] sm:$0xff] }
0x1623   :  { %1913 = vmatmul.mubr.msk.f32.vlgmr.msra.gmra.mrb[12].mxu1 %vm194_vm3, %v1450_v26 }
0x16f6   :  { %v1914_v43 = vpop.f32.mrb[12].mxu1 }
0x16f7   :  { %2257 = vtanh.f32 %v1914_v43  ;;  %v1531_v42 = vpop.f32.mrb[13].mxu1 }
0x16f8   :  { %2259 = vtanh.f32 %v1531_v42 }
0x1701   :  { %v2258_v41 = vpop.eup %2257 }
0x1702   :  { %v2260_v38 = vpop.eup %2259  ;;  %v1550_v46 = vmul.f32 %v2258_v41, %v1866_v44 }
0x1703   :  { %v1549_v15 = vmul.f32 %v2260_v38, %v1866_v44 }
0x1704   :  { %v1554_v47 = vsel %vm194_vm3, %v1550_v46, 0.0 }
0x1705   :  { %1555 = vadd.xlane.f32.xlu0 %v1554_v47  ;;  %v1551_v48 = vsel %vm194_vm3, %v1549_v15, 0.0 }
0x1706   :  { %1552 = vadd.xlane.f32.xlu1 %v1551_v48 }
0x1792   :  { %v1556_v50 = vpop.xlane.xlu0 %1555 }
0x1793   :  { %v1553_v45 = vpop.xlane.xlu1 %1552 }
0x1794   :  { %v1557_v21 = vmax.f32 %v1553_v45, %v1556_v50 }
0x1796   :  { %v1558_v23 = vrot.slane %v1557_v21, 4 }
0x1798   :  { %v1559_v28 = vmax.f32 %v1557_v21, %v1558_v23 }
0x179a   :  { %v1560_v29 = vrot.slane %v1559_v28, 2 }
0x179c   :  { %v1561_v32 = vmax.f32 %v1559_v28, %v1560_v29 }
0x179e   :  { %v1562_v57 = vrot.slane %v1561_v32, 1 }
0x17a0   :  { %v1563_v49 = vmax.f32 %v1561_v32, %v1562_v57 }
0x17a2   :  { %2114 = vpush %v1563_v49 }
0x17d3   :  { %s2115_s7 = spop %2114 }
0x17d4   :  { %v1565_v51 = vstv %s2115_s7 }
0x17d5   :  { %v1566_v52 = vsub.f32 %v1553_v45, %v1565_v51  ;;  %v1567_v53 = vsub.f32 %v1556_v50, %v1565_v51 }
0x17d7   :  { %v1568_v54 = vmul.f32 1.442695, %v1566_v52  ;;  %v1570_v56 = vmul.f32 1.442695, %v1567_v53 }
0x17d9   :  { %2261 = vpow2.f32 %v1568_v54 }
0x17da   :  { %2263 = vpow2.f32 %v1570_v56 }
0x17e3   :  { %v2262_v11 = vpop.eup %2261 }
0x17e4   :  { %v2264_v55 = vpop.eup %2263  ;;  %v1573_v58 = vmul.f32 %v2262_v11, %v1449_v35 }
0x17e5   :  { %v1574_v59 = vmul.f32 %v2264_v55, %v1450_v26  ;;  %v2100_v36 = vpack.c.bf16 %v2264_v55, %v2262_v11 }
0x17e7   :  { %v2097_v60 = vpack.c.bf16 %v1574_v59, %v1573_v58 }
0x17e9   :  { %2098 = vmatpush3.bf16.msra.mxu0 %v2097_v60 }
0x17ea   :  { %2099 = vmatprep.subr.bf16.mxu0 %v2347_v16 }
0x17ec   :  { %1920 = vmatmul.mubr.msk.f32.vlgmr.msra.gmra.mrb[8].mxu0 %vm82_vm0, %v1572_v30 }
0x17ed   :  { %2101 = vmatpush3.bf16.msra.mxu0 %v2100_v36  ;;  %1926 = vmatprep.mubr.msk.f32.mxu0 %vm2348_vm11, %v2343_v0 }
0x17ee   :  { %2102 = vmatprep.subr.bf16.mxu0 %v2347_v16 }
0x17f0   :  { %1927 = vmatmul.mubr.msk.f32.vlgmr.msra.gmra.mrb[10].mxu0 %vm82_vm0, %v1572_v30 }
0x17f1   :  { %1945 = vmatprep.mubr.msk.f32.mxu0 %vm2348_vm11, %v2343_v0  ;;  %2104 = vmatpush3.bf16.msra.mxu0 %v2103_v62  ;;  %v2106_v0 = vpack.c.bf16 %v1728_v24, %v1727_v37 }
0x17f2   :  { %2105 = vmatprep.subr.bf16.mxu0 %v2347_v16 }
0x17f5   :  { %2107 = vmatpush3.bf16.msra.mxu0 %v2106_v0 }
0x17f6   :  { %2108 = vmatprep.subr.bf16.mxu0 %v2347_v16 }
0x17f9   :  { %2110 = vmatpush3.bf16.msra.mxu0 %v2109_v1 }
0x17fa   :  { %2111 = vmatprep.subr.bf16.mxu0 %v2347_v16 }
0x17fd   :  { %2113 = vmatpush3.bf16.msra.mxu0 %v2112_v4 }
0x18bf   :  { %v1644_v5 = vpop.f32.mrb[8].mxu0 }
0x18c0   :  { %v1921_v6 = vpop.f32.mrb[9].mxu0 }
0x18c3   :  { %v1714_v7 = vpop.f32.mrb[10].mxu0 }
0x18c4   :  { %2265 = vrcp.f32 %v1714_v7  ;;  %v1928_v8 = vpop.f32.mrb[11].mxu0 }
0x18ce   :  { %v2266_v9 = vpop.eup %2265 }
0x18cf   :  { %1721 = vperm.xlu0 %2128, %v2266_v9  }
0x194e   :  { %v1722_v10 = vpop.permute.xlu0 %1721 }
0x194f   :  { %v1724_v12 = vmul.f32 %v1722_v10, %v1644_v5 }
0x1951   :  { %1946 = vmatmul.mubr.msk.f32.vlgmr.msra.gmra.mrb[12].mxu0 %vm194_vm3, %v1724_v12 }
0x1a24   :  { %v1809_v14 = vpop.f32.mrb[12].mxu0 }
0x1a25   :  { %v1810_v19 = vadd.f32 %v1869_v13, %v1809_v14  ;;  %v1947_v18 = vpop.f32.mrb[13].mxu0 }
0x1a27   :  { %1814 = vst.msk [vmem:[#allocation8] sm:$0x3] %vm1813_vm12, %v1810_v19 }
0x1a28   :  { %2322 = shalt.err (!%p2319_p6)
}
0x1a29   :  { %s2323_s18 = scalar_lea.hbm %s2868_s10, 32 }
0x1a2a   :  { %p2324_p7 = scmp.ne.s32.totalorder %s2868_s10, %s2323_s18  ;;  %p2327_p8 = scmp.lt.u32.totalorder %s2323_s18, %s2868_s10 }
0x1a2c   :  { %p2329_p9 = pnand %p2327_p8, %p2324_p7 }
0x1a2e   :  { %2332 = shalt.err (!%p2329_p9)
}
0x1a2f   :  { %1824 = dma.vmem_to_hbm [thread:$0]  %s1822_s17, 32, %s2868_s10, [#allocation5]  }
0x1a30   :  { %2337 = dma.done.wait [#allocation5], 32  }
0x1a31   :  { %2338 = vsyncadd [#allocation5], 4294967264 }
0x1a32   :  { %1828 = vsyncpa [#allocation4], 1 }
0x1a33   :  { %1829 = vsyncpa [#allocation7], 1 }
0x1a34   :  { %1830 = vsyncpa [#allocation5], 1 }

</bundles_post_ra>
